<compile_context>
chip_gen: v7x
topology: tpu7x:2x2x1
jax: 0.10.0
libtpu: 0.0.40
codegen_flags: <defaults>
</compile_context>

<pallas_src>
import jax
import jax.numpy as jnp
from jax.experimental import pallas as pl
from jax.experimental.pallas import tpu as pltpu


# --------------------------------------------------------------------------
# Kernel 1: logits (vocab-tiled) + online per-row softmax statistics.
# Grid = (row_tiles, vocab_tiles); vocab axis last, "arbitrary".
# --------------------------------------------------------------------------
def _logits_stats_kernel(x_ref, w1_ref, b1_ref, w2_ref, b2_ref,
                         logits_ref, m_ref, l_ref, h_scratch):
    j = pl.program_id(1)

    # First vocab tile of this row tile: compute hidden once, cache it (bf16)
    # in VMEM scratch, and initialize the resident softmax-stat accumulators.
    @pl.when(j == 0)
    def _():
        h = jnp.tanh(
            jnp.dot(x_ref[...], w1_ref[...],
                    preferred_element_type=jnp.float32)
            + b1_ref[...]
        )
        h_scratch[...] = h.astype(h_scratch.dtype)
        m_ref[...] = jnp.full_like(m_ref, -jnp.inf)
        l_ref[...] = jnp.zeros_like(l_ref)

    # logits tile = hidden @ W2[:, j-tile] + b2[:, j-tile]   (bf16 MXU, f32 acc)
    logits = (
        jnp.dot(h_scratch[...], w2_ref[...],
                preferred_element_type=jnp.float32)
        + b2_ref[...]
    )
    logits_ref[...] = logits.astype(logits_ref.dtype)

    # Online accumulation of row max and sum-exp across vocab tiles.
    m_prev = m_ref[...]
    m_new = jnp.maximum(m_prev, jnp.max(logits, axis=-1, keepdims=True))
    alpha = jnp.exp(m_prev - m_new)
    l_ref[...] = alpha * l_ref[...] + jnp.sum(jnp.exp(logits - m_new),
                                              axis=-1, keepdims=True)
    m_ref[...] = m_new


# --------------------------------------------------------------------------
# Kernel 2: normalize each logits tile with the precomputed row stats.
# --------------------------------------------------------------------------
def _softmax_kernel(logits_ref, m_ref, l_ref, probs_ref):
    inv_l = pl.reciprocal(l_ref[...], approx=True)  # EUP vrcp, off the VPU path
    p = jnp.exp(logits_ref[...].astype(jnp.float32) - m_ref[...]) * inv_l
    probs_ref[...] = p.astype(probs_ref.dtype)


def seq2seq_head(x, w1, b1, w2, b2, *, tm=256, tv=256,
                 logits_dtype=jnp.float32, probs_dtype=jnp.float32):
    """x: (M, H) bf16 activations -> (logits, probs), each (M, V).

    Weights w1 (H,H) / w2 (H,V) are bf16; biases are f32.
    """
    M, H = x.shape
    V = w2.shape[1]
    tv = min(tv, V)
    assert V % tv == 0 and tv % 128 == 0, (
        "vocab tile must divide V and be lane-dense (multiple of 128)")

    # Pad the row dimension to a multiple of the row tile (no assert on M).
    M_pad = pl.cdiv(M, tm) * tm
    if M_pad != M:
        x = jnp.pad(x, ((0, M_pad - M), (0, 0)))

    grid = (M_pad // tm, V // tv)

    vmem_limit = 48 * 1024 * 1024  # headroom below v7x's 64 MiB physical VMEM

    logits, row_m, row_l = pl.pallas_call(
        _logits_stats_kernel,
        out_shape=(
            jax.ShapeDtypeStruct((M_pad, V), logits_dtype),
            jax.ShapeDtypeStruct((M_pad, 1), jnp.float32),   # row max
            jax.ShapeDtypeStruct((M_pad, 1), jnp.float32),   # row sum-exp
        ),
        grid_spec=pltpu.PrefetchScalarGridSpec(
            num_scalar_prefetch=0,
            grid=grid,
            in_specs=[
                pl.BlockSpec((tm, H), lambda i, j: (i, 0)),   # x row tile
                pl.BlockSpec((H, H), lambda i, j: (0, 0)),    # W1 (resident)
                pl.BlockSpec((1, H), lambda i, j: (0, 0)),    # b1
                pl.BlockSpec((H, tv), lambda i, j: (0, j)),   # W2 vocab tile
                pl.BlockSpec((1, tv), lambda i, j: (0, j)),   # b2 vocab tile
            ],
            out_specs=[
                pl.BlockSpec((tm, tv), lambda i, j: (i, j)),  # logits tile
                pl.BlockSpec((tm, 1), lambda i, j: (i, 0)),   # row max (resident)
                pl.BlockSpec((tm, 1), lambda i, j: (i, 0)),   # row sum-exp (resident)
            ],
            scratch_shapes=[pltpu.VMEM((tm, H), w2.dtype)],   # cached hidden (bf16)
        ),
        compiler_params=pltpu.CompilerParams(
            dimension_semantics=("parallel", "arbitrary"),
            vmem_limit_bytes=vmem_limit,
        ),
    )(x, w1, b1, w2, b2)

    probs = pl.pallas_call(
        _softmax_kernel,
        out_shape=jax.ShapeDtypeStruct((M_pad, V), probs_dtype),
        grid_spec=pltpu.PrefetchScalarGridSpec(
            num_scalar_prefetch=0,
            grid=grid,
            in_specs=[
                pl.BlockSpec((tm, tv), lambda i, j: (i, j)),
                pl.BlockSpec((tm, 1), lambda i, j: (i, 0)),
                pl.BlockSpec((tm, 1), lambda i, j: (i, 0)),
            ],
            out_specs=pl.BlockSpec((tm, tv), lambda i, j: (i, j)),
        ),
        compiler_params=pltpu.CompilerParams(
            dimension_semantics=("parallel", "parallel"),
            vmem_limit_bytes=vmem_limit,
        ),
    )(logits, row_m, row_l)

    if M_pad != M:
        logits = logits[:M]
        probs = probs[:M]
    return logits, probs


def seq2seq_forward(src_ids, tgt_ids, params):
    """Full forward: token ids -> (logits, probs) of shape (B, T, V)."""
    emb_table = params["emb"]
    B, T = tgt_ids.shape

    # --- glue (plain JAX): embedding lookup + encoder mean-pool context ---
    emb_src = emb_table[src_ids]                         # (B, S, H) f32
    emb_tgt = emb_table[tgt_ids]                         # (B, T, H) f32
    context = jnp.mean(emb_src, axis=1, keepdims=True)   # (B, 1, H)
    x = (emb_tgt + context).reshape(B * T, -1).astype(jnp.bfloat16)

    # --- hot path in Pallas ---
    logits_flat, probs_flat = seq2seq_head(
        x, params["w1"], params["b1"], params["w2"], params["b2"])

    V = params["w2"].shape[1]
    return logits_flat.reshape(B, T, V), probs_flat.reshape(B, T, V)


def make_params(key, hidden, vocab):
    k_emb, k_w1, k_w2 = jax.random.split(key, 3)
    scale = 1.0 / jnp.sqrt(hidden)
    return {
        "emb": jax.random.normal(k_emb, (vocab, hidden), jnp.float32) * 0.1,
        # MXU-friendly bf16 weights, f32 biases.
        "w1": (jax.random.normal(k_w1, (hidden, hidden), jnp.float32)
               * scale).astype(jnp.bfloat16),
        "b1": jnp.zeros((1, hidden), jnp.float32),
        "w2": (jax.random.normal(k_w2, (hidden, vocab), jnp.float32)
               * scale).astype(jnp.bfloat16),
        "b2": jnp.zeros((1, vocab), jnp.float32),
    }


if __name__ == "__main__":
    # Small shapes consistent with the seq2seq interface contract, but
    # lane-dense (H multiple of 128) and with 2 vocab tiles to exercise the
    # online-softmax accumulation across the vocab grid axis.
    batch = 2
    src_len = 8
    tgt_len = 8
    hidden = 128
    vocab = 512

    key = jax.random.PRNGKey(0)
    k_params, k_src, k_tgt = jax.random.split(key, 3)

    params = make_params(k_params, hidden, vocab)
    src_ids = jax.random.randint(k_src, (batch, src_len), 0, vocab)
    tgt_ids = jax.random.randint(k_tgt, (batch, tgt_len), 0, vocab)

    logits, probs = seq2seq_forward(src_ids, tgt_ids, params)
    jax.block_until_ready((logits, probs))

    # Reference in plain JAX using the same bf16-in / f32-accumulate recipe.
    emb_src = params["emb"][src_ids]
    emb_tgt = params["emb"][tgt_ids]
    ctx = jnp.mean(emb_src, axis=1, keepdims=True)
    x_ref = (emb_tgt + ctx).reshape(batch * tgt_len, hidden).astype(jnp.bfloat16)
    h_ref = jnp.tanh(
        jnp.dot(x_ref, params["w1"], preferred_element_type=jnp.float32)
        + params["b1"])
    logits_ref = (
        jnp.dot(h_ref.astype(jnp.bfloat16), params["w2"],
                preferred_element_type=jnp.float32)
        + params["b2"]).reshape(batch, tgt_len, vocab)
    probs_ref = jax.nn.softmax(logits_ref, axis=-1)

    assert logits.shape == (batch, tgt_len, vocab)
    assert probs.shape == (batch, tgt_len, vocab)
    assert jnp.allclose(logits, logits_ref, atol=1e-2, rtol=1e-2), "logits mismatch"
    assert jnp.allclose(probs, probs_ref, atol=2e-3, rtol=2e-2), "probs mismatch"
    assert jnp.allclose(probs.sum(-1), 1.0, atol=5e-3), "probs do not sum to 1"

    print("KERNEL_OK")
</pallas_src>

<mosaic_0001>
module attributes {stable_mosaic.version = 11 : i64} {
  func.func @_logits_stats_kernel(%arg0: i32, %arg1: i32, %arg2: memref<256x128xbf16, #tpu.memory_space<vmem>>, %arg3: memref<128x128xbf16, #tpu.memory_space<vmem>>, %arg4: memref<1x128xf32, #tpu.memory_space<vmem>>, %arg5: memref<128x256xbf16, #tpu.memory_space<vmem>>, %arg6: memref<1x256xf32, #tpu.memory_space<vmem>>, %arg7: memref<256x256xf32, #tpu.memory_space<vmem>>, %arg8: memref<256x1xf32, #tpu.memory_space<vmem>>, %arg9: memref<256x1xf32, #tpu.memory_space<vmem>>, %arg10: memref<256x128xbf16, #tpu.memory_space<vmem>>) attributes {dimension_semantics = [#tpu.dimension_semantics<parallel>, #tpu.dimension_semantics<arbitrary>], iteration_bounds = array<i64: 1, 2>, scalar_prefetch = 0 : i64, scratch_operands = 1 : i64, tpu.core_type = #tpu.core_type<tc>, window_params = [{transform_indices = @transform_0, window_bounds = array<i64: 256, 128>}, {pipeline_mode = #tpu.pipeline_mode<synchronous>, transform_indices = @transform_1, window_bounds = array<i64: 128, 128>}, {pipeline_mode = #tpu.pipeline_mode<synchronous>, transform_indices = @transform_2, window_bounds = array<i64: 1, 128>}, {transform_indices = @transform_3, window_bounds = array<i64: 128, 256>}, {transform_indices = @transform_4, window_bounds = array<i64: 1, 256>}, {transform_indices = @transform_5, window_bounds = array<i64: 256, 256>}, {transform_indices = @transform_6, window_bounds = array<i64: 256, 1>}, {transform_indices = @transform_7, window_bounds = array<i64: 256, 1>}]} {
    %c0_i32 = arith.constant 0 : i32
    %0 = arith.cmpi eq, %arg1, %c0_i32 : i32
    %1 = arith.extui %0 : i1 to i32
    %c0_i32_0 = arith.constant 0 : i32
    %2 = arith.cmpi ne, %1, %c0_i32_0 : i32
    scf.if %2 {
      %c0_18 = arith.constant 0 : index
      %c0_19 = arith.constant 0 : index
      %26 = vector.load %arg2[%c0_18, %c0_19] : memref<256x128xbf16, #tpu.memory_space<vmem>>, vector<256x128xbf16>
      %c0_20 = arith.constant 0 : index
      %c0_21 = arith.constant 0 : index
      %27 = vector.load %arg3[%c0_20, %c0_21] : memref<128x128xbf16, #tpu.memory_space<vmem>>, vector<128x128xbf16>
      %cst_22 = arith.constant dense<0.000000e+00> : vector<256x128xf32>
      %28 = tpu.matmul %26, %27, %cst_22 {dimension_numbers = #tpu.dot_dimension_numbers<[1], [0], [0], [1], [0, 0, 1, 1], [], []>} : vector<256x128xbf16>, vector<128x128xbf16>, vector<256x128xf32> -> vector<256x128xf32>
      %c0_23 = arith.constant 0 : index
      %c0_24 = arith.constant 0 : index
      %29 = vector.load %arg4[%c0_23, %c0_24] : memref<1x128xf32, #tpu.memory_space<vmem>>, vector<1x128xf32>
      %30 = vector.broadcast %29 : vector<1x128xf32> to vector<256x128xf32>
      %31 = arith.addf %28, %30 : vector<256x128xf32>
      %32 = math.tanh %31 : vector<256x128xf32>
      %33 = arith.truncf %32 : vector<256x128xf32> to vector<256x128xbf16>
      %c0_25 = arith.constant 0 : index
      %c0_26 = arith.constant 0 : index
      %34 = vector.load %arg10[%c0_25, %c0_26] : memref<256x128xbf16, #tpu.memory_space<vmem>>, vector<256x128xbf16>
      tpu.vector_store %arg10[%c0_25, %c0_26], %33 {strides = array<i32>} : memref<256x128xbf16, #tpu.memory_space<vmem>>, vector<256x128xbf16>,
      %cst_27 = arith.constant 0xFF800000 : f32
      %35 = vector.broadcast %cst_27 : f32 to vector<256x1xf32>
      %c0_28 = arith.constant 0 : index
      %c0_29 = arith.constant 0 : index
      %36 = vector.load %arg8[%c0_28, %c0_29] : memref<256x1xf32, #tpu.memory_space<vmem>>, vector<256x1xf32>
      tpu.vector_store %arg8[%c0_28, %c0_29], %35 {strides = array<i32>} : memref<256x1xf32, #tpu.memory_space<vmem>>, vector<256x1xf32>,
      %cst_30 = arith.constant 0.000000e+00 : f32
      %37 = vector.broadcast %cst_30 : f32 to vector<256x1xf32>
      %c0_31 = arith.constant 0 : index
      %c0_32 = arith.constant 0 : index
      %38 = vector.load %arg9[%c0_31, %c0_32] : memref<256x1xf32, #tpu.memory_space<vmem>>, vector<256x1xf32>
      tpu.vector_store %arg9[%c0_31, %c0_32], %37 {strides = array<i32>} : memref<256x1xf32, #tpu.memory_space<vmem>>, vector<256x1xf32>,
    } else {
    }
    %c0 = arith.constant 0 : index
    %c0_1 = arith.constant 0 : index
    %3 = vector.load %arg10[%c0, %c0_1] : memref<256x128xbf16, #tpu.memory_space<vmem>>, vector<256x128xbf16>
    %c0_2 = arith.constant 0 : index
    %c0_3 = arith.constant 0 : index
    %4 = vector.load %arg5[%c0_2, %c0_3] : memref<128x256xbf16, #tpu.memory_space<vmem>>, vector<128x256xbf16>
    %cst = arith.constant dense<0.000000e+00> : vector<256x256xf32>
    %5 = tpu.matmul %3, %4, %cst {dimension_numbers = #tpu.dot_dimension_numbers<[1], [0], [0], [1], [0, 0, 1, 1], [], []>} : vector<256x128xbf16>, vector<128x256xbf16>, vector<256x256xf32> -> vector<256x256xf32>
    %c0_4 = arith.constant 0 : index
    %c0_5 = arith.constant 0 : index
    %6 = vector.load %arg6[%c0_4, %c0_5] : memref<1x256xf32, #tpu.memory_space<vmem>>, vector<1x256xf32>
    %7 = vector.broadcast %6 : vector<1x256xf32> to vector<256x256xf32>
    %8 = arith.addf %5, %7 : vector<256x256xf32>
    %c0_6 = arith.constant 0 : index
    %c0_7 = arith.constant 0 : index
    %9 = vector.load %arg7[%c0_6, %c0_7] : memref<256x256xf32, #tpu.memory_space<vmem>>, vector<256x256xf32>
    tpu.vector_store %arg7[%c0_6, %c0_7], %8 {strides = array<i32>} : memref<256x256xf32, #tpu.memory_space<vmem>>, vector<256x256xf32>,
    %c0_8 = arith.constant 0 : index
    %c0_9 = arith.constant 0 : index
    %10 = vector.load %arg8[%c0_8, %c0_9] : memref<256x1xf32, #tpu.memory_space<vmem>>, vector<256x1xf32>
    %cst_10 = arith.constant dense<0xFF800000> : vector<256xf32>
    %11 = vector.multi_reduction <maximumf>, %8, %cst_10 [1] : vector<256x256xf32> to vector<256xf32>
    %12 = vector.shape_cast %11 : vector<256xf32> to vector<256x1xf32>
    %13 = arith.maximumf %10, %12 : vector<256x1xf32>
    %14 = arith.subf %10, %13 : vector<256x1xf32>
    %15 = math.exp %14 : vector<256x1xf32>
    %c0_11 = arith.constant 0 : index
    %c0_12 = arith.constant 0 : index
    %16 = vector.load %arg9[%c0_11, %c0_12] : memref<256x1xf32, #tpu.memory_space<vmem>>, vector<256x1xf32>
    %17 = arith.mulf %15, %16 : vector<256x1xf32>
    %18 = vector.broadcast %13 : vector<256x1xf32> to vector<256x256xf32>
    %19 = arith.subf %8, %18 : vector<256x256xf32>
    %20 = math.exp %19 : vector<256x256xf32>
    %cst_13 = arith.constant dense<0.000000e+00> : vector<256xf32>
    %21 = vector.multi_reduction <add>, %20, %cst_13 [1] : vector<256x256xf32> to vector<256xf32>
    %22 = vector.shape_cast %21 : vector<256xf32> to vector<256x1xf32>
    %23 = arith.addf %17, %22 : vector<256x1xf32>
    %c0_14 = arith.constant 0 : index
    %c0_15 = arith.constant 0 : index
    %24 = vector.load %arg9[%c0_14, %c0_15] : memref<256x1xf32, #tpu.memory_space<vmem>>, vector<256x1xf32>
    tpu.vector_store %arg9[%c0_14, %c0_15], %23 {strides = array<i32>} : memref<256x1xf32, #tpu.memory_space<vmem>>, vector<256x1xf32>,
    %c0_16 = arith.constant 0 : index
    %c0_17 = arith.constant 0 : index
    %25 = vector.load %arg8[%c0_16, %c0_17] : memref<256x1xf32, #tpu.memory_space<vmem>>, vector<256x1xf32>
    tpu.vector_store %arg8[%c0_16, %c0_17], %13 {strides = array<i32>} : memref<256x1xf32, #tpu.memory_space<vmem>>, vector<256x1xf32>,
    return
  }
  func.func @transform_0(%arg0: i32, %arg1: i32) -> (i32, i32) {
    %c0_i32 = arith.constant 0 : i32
    %c0_i32_0 = arith.constant 0 : i32
    return %arg0, %c0_i32 : i32, i32
  }
  func.func @transform_1(%arg0: i32, %arg1: i32) -> (i32, i32) {
    %c0_i32 = arith.constant 0 : i32
    %c0_i32_0 = arith.constant 0 : i32
    %c0_i32_1 = arith.constant 0 : i32
    return %c0_i32, %c0_i32_0 : i32, i32
  }
  func.func @transform_2(%arg0: i32, %arg1: i32) -> (i32, i32) {
    %c0_i32 = arith.constant 0 : i32
    %c0_i32_0 = arith.constant 0 : i32
    %c0_i32_1 = arith.constant 0 : i32
    return %c0_i32, %c0_i32_0 : i32, i32
  }
  func.func @transform_3(%arg0: i32, %arg1: i32) -> (i32, i32) {
    %c0_i32 = arith.constant 0 : i32
    %c0_i32_0 = arith.constant 0 : i32
    return %c0_i32, %arg1 : i32, i32
  }
  func.func @transform_4(%arg0: i32, %arg1: i32) -> (i32, i32) {
    %c0_i32 = arith.constant 0 : i32
    %c0_i32_0 = arith.constant 0 : i32
    return %c0_i32, %arg1 : i32, i32
  }
  func.func @transform_5(%arg0: i32, %arg1: i32) -> (i32, i32) {
    %c0_i32 = arith.constant 0 : i32
    return %arg0, %arg1 : i32, i32
  }
  func.func @transform_6(%arg0: i32, %arg1: i32) -> (i32, i32) {
    %c0_i32 = arith.constant 0 : i32
    %c0_i32_0 = arith.constant 0 : i32
    return %arg0, %c0_i32 : i32, i32
  }
  func.func @transform_7(%arg0: i32, %arg1: i32) -> (i32, i32) {
    %c0_i32 = arith.constant 0 : i32
    %c0_i32_0 = arith.constant 0 : i32
    return %arg0, %c0_i32 : i32, i32
  }
}

</mosaic_0001>

<bundles_post_ra>
// kernel: tpu_custom_call.1
= control target key start
LH: loop header
LB: loop body
LE: loop exit
PB: predicated region body
PF: predicated region fallthrough
CT: control target
= control target key end

     0   :  { %s5025_s0 = inlined_call_operand.hbm [shape: bf16[256,128], index: 0, kind: input, shape index: {}]   ;;  %s5026_s1 = inlined_call_operand.hbm [shape: bf16[128,128], index: 1, kind: input, shape index: {}]   ;;  %s5027_s2 = inlined_call_operand.vmem [shape: f32[1,128], index: 2, kind: input, shape index: {}]   ;;  %s5028_s3 = inlined_call_operand.hbm [shape: bf16[128,512], index: 3, kind: input, shape index: {}]   ;;  %s5029_s4 = inlined_call_operand.vmem [shape: f32[1,512], index: 4, kind: input, shape index: {}]   ;;  %s5030_s5 = inlined_call_operand.hbm [shape: f32[256,512], index: 5, kind: output, shape index: {0}]   ;;  %s5031_s6 = inlined_call_operand.vmem [shape: f32[256,1], index: 6, kind: output, shape index: {1}]   ;;  %s5032_s7 = inlined_call_operand.vmem [shape: f32[256,1], index: 7, kind: output, shape index: {2}]  }
   0x1   :  { %5117 = sst [smem:[#allocation94_spill]] %s5030_s5 }
   0x2   :  { %13 = vsyncpa [#allocation4], 0 }
   0x3   :  { %14 = vsyncpa [#allocation7], 0 }
   0x4   :  { %15 = vsyncpa [#allocation5], 0 }
   0x5   :  { %17 = vsyncpa [#allocation5 + $0x1], 0  ;;  %s3135_s24 = smov 0   ;;  %s3137_s25 = smov 0  }
   0x6   :  { %s3139_s26 = smov 0   ;;  %s3141_s27 = smov 0  }
   0x7   :  { %s3143_s28 = smov 0   ;;  %s3145_s29 = smov 0  }
   0x8 LB: > { %5118 = sst [smem:[#allocation14_spill]] %s3058_s24  ;;  %s3166_s30 = sadd.s32 4294967295, %s3078_s29   ;;  %s3078_s29 = sphi %s3145_s29, %s23_s29   ;;  %s3074_s28 = sphi %s3143_s28, %s5331_s28   ;;  %s3070_s27 = sphi %s3141_s27, %s5330_s27   ;;  %s3066_s26 = sphi %s3139_s26, %s5329_s26   ;;  %s3062_s25 = sphi %s3137_s25, %s5328_s25   ;;  %s3058_s24 = sphi %s3135_s24, %s5327_s24  }
   0x9   : > { %s2330_s8 = sadd.s32 4294967294, %s3078_s29   ;;  %p117_p0 = scmp.ne.s32.totalorder %s3066_s26, %s3062_s25 }
   0xa   : > { %p118_p1 = scmp.eq.s32.totalorder %s3078_s29, 0  ;;  %p123_p2 = scmp.ne.s32.totalorder %s3062_s25, %s3058_s24 }
   0xb   : > { %p5033_p3 = scmp.eq.s32.totalorder %s3166_s30, 0  ;;  %p175_p4 = scmp.eq.s32.totalorder %s3166_s30, 1 }
   0xc   : > { %p3177_p5 = por %p118_p1, %p117_p0  ;;  %p181_p6 = scmp.eq.s32.totalorder %s2330_s8, 1 }
   0xd   : > { %p3183_p7 = por %p5033_p3, %p123_p2  ;;  %p3187_p8 = por %p175_p4, %p117_p0 }
   0xe   : > { %p3191_p9 = por %p181_p6, %p123_p2  ;;  %p2331_p10 = scmp.ge.s32.totalorder %s3078_s29, 1 }
   0xf   : > { %s5120_s11 = scalar_select %p3183_p7, 1, 0 }
  0x10   : > { %s5121_s12 = scalar_select %p3187_p8, 1, 0 }
  0x11   : > { %s5122_s13 = scalar_select %p3191_p9, 1, 0 }
  0x12   : > { %p240_p11 = scmp.lt.s32.totalorder %s3078_s29, 3  ;;  %s3080_s15 = smov [#allocation3]  }
  0x13   : > { %5123 = sst [smem:[#allocation15_spill]] %s5122_s13  ;;  %s255_s16 = sshll.u32 %s3080_s15, 4  ;;  %s3201_s16 = int_to_ptr.vmem [resolvable:$true] %s255_s16 }
  0x14   : > { %p3197_p12 = pnand %p2331_p10, %p240_p11  ;;  %p2530_p1 = scmp.lt.s32.totalorder %s3078_s29, 2 }
  0x15   : > { %s3081_s18 = smov [#allocation6]   ;;  %s2902_s23 = scalar_lea.hbm %s5025_s0, 2048 }
  0x16   : > { %p2513_p13 = pneg %p3197_p12  ;;  %s268_s19 = sshll.u32 %s3081_s18, 4  ;;  %s3219_s19 = int_to_ptr.vmem [resolvable:$true] %s268_s19 }
  0x17   : > { %p3215_p4 = pnand %p2530_p1, %p3177_p5  ;;  %p2903_p6 = scmp.ne.s32.totalorder %s5025_s0, %s2902_s23 }
  0x18   : > { %p3209_p2 = pnand %p2513_p13, %p5033_p3  ;;  %p2909_p5 = scmp.lt.u32.totalorder %s2902_s23, %s5025_s0 }
  0x1a   : > { %p2904_p10 = pneg %p3209_p2 }
  0x1c   : > { %p2905_p11 = pnand %p2904_p10, %p2903_p6 }
  0x1e   : > { %p2906_p13 = pneg %p2905_p11 }
  0x20   : > { %p2911_p1 = pnand %p2909_p5, %p2906_p13 }
  0x22   : > { %2914 = shalt.err (!%p2911_p1)
}
  0x23   : > { %s2915_s21 = scalar_lea.vmem %s3201_s16, 2048  ;;  %p2923_p8 = scmp.lt.s32.totalorder %s3201_s16, %s3201_s16 }
  0x24   : > { %p2916_p0 = scmp.ne.s32.totalorder %s3201_s16, %s2915_s21  ;;  %p2924_p6 = scmp.lt.s32.totalorder %s2915_s21, %s2915_s21 }
  0x26   : > { %p2918_p3 = pnand %p2916_p0, %p2904_p10  ;;  %p2925_p11 = por %p2924_p6, %p2923_p8 }
  0x28   : > { %p2919_p9 = pneg %p2918_p3 }
  0x2a   : > { %p2926_p7 = pnand %p2925_p11, %p2919_p9 }
  0x2c   : > { %2929 = shalt.err (!%p2926_p7)
}
  0x2d   : > { %s3082_s22 = smov 64   ;;  %s3083_s23 = smov 4  }
  0x2e   : > { %2516 = dma.hbm_to_vmem [thread:$0]  (!%p3209_p2), %s5025_s0, 2048, %s3201_s16, [#allocation4], %s3082_s22, %s3082_s22, %s3083_s23  }
  0x2f   : > { %s2930_s9 = scalar_lea.hbm %s5026_s1, 1024 }
  0x30   : > { %p2931_p3 = scmp.ne.s32.totalorder %s5026_s1, %s2930_s9  ;;  %p2937_p9 = scmp.lt.u32.totalorder %s2930_s9, %s5026_s1 }
  0x32   : > { %p2933_p7 = pnand %p2931_p3, %p2904_p10 }
  0x34   : > { %p2934_p8 = pneg %p2933_p7 }
  0x36   : > { %p2939_p0 = pnand %p2937_p9, %p2934_p8 }
  0x38   : > { %2942 = shalt.err (!%p2939_p0)
}
  0x39   : > { %s2943_s16 = scalar_lea.vmem %s3219_s19, 1024  ;;  %p2951_p6 = scmp.lt.s32.totalorder %s3219_s19, %s3219_s19 }
  0x3a   : > { %p2944_p13 = scmp.ne.s32.totalorder %s3219_s19, %s2943_s16  ;;  %p2952_p11 = scmp.lt.s32.totalorder %s2943_s16, %s2943_s16 }
  0x3c   : > { %p2946_p5 = pnand %p2944_p13, %p2904_p10  ;;  %p2953_p3 = por %p2952_p11, %p2951_p6 }
  0x3e   : > { %p2947_p1 = pneg %p2946_p5 }
  0x40   : > { %p2954_p7 = pnand %p2953_p3, %p2947_p1 }
  0x42   : > { %2957 = shalt.err (!%p2954_p7)
}
  0x43   : > { %2519 = dma.hbm_to_vmem [thread:$0]  (!%p3209_p2), %s5026_s1, 1024, %s3219_s19, [#allocation7], %s3082_s22, %s3082_s22, %s3083_s23  }
  0x44   : > { %s32_s9 = sadd.s32 1, %s3074_s28  ;;  %s285_s13 = sand.u32 1, %s3078_s29  }
  0x45   : > { %p33_p10 = scmp.ge.s32.totalorder %s32_s9, 2  ;;  %s287_s8 = sand.u32 1, %s3066_s26  }
  0x46   : > { %s2395_s15 = sshll.u32 %s3074_s28, 7  ;;  %s2335_s17 = sshll.u32 %s287_s8, 7 }
  0x47   : > { %s5333_s9 = smov (%p33_p10, %s32_s9), 0  ;;  %s3282_s21 = scalar_lea.hbm %s5028_s3, %s2395_s15 }
  0x48   : > { %s107_s19 = ssub.s32 %s3074_s28, %s5333_s9  ;;  %s289_s22 = scalar_lea.vmem [#allocation8], %s2335_s17 }
  0x49   : > { %p108_p2 = scmp.eq.s32.totalorder %s107_s19, 0  ;;  %s296_s23 = sshll.u32 %s289_s22, 4  ;;  %s3286_s23 = int_to_ptr.vmem [resolvable:$true] %s296_s23 }
  0x4a   : > { %s5127_s16 = sadd.s32 1, %s3066_s26  ;;  %s3293_s24 = scalar_lea.sflag [#allocation4], %s285_s13 }
  0x4b   : > { %s3291_s5 = scalar_select %p108_p2, %s3066_s26, %s5127_s16  }
  0x4c   : > { %s2958_s8 = scalar_lea.hbm %s3282_s21, 2048  ;;  %p2960_p9 = pneg %p3215_p4 }
  0x4d   : > { %p2959_p8 = scmp.ne.s32.totalorder %s3282_s21, %s2958_s8  ;;  %s2963_s17 = scalar_lea.hbm %s5028_s3, 4096 }
  0x4e   : > { %p2964_p5 = scmp.lt.u32.totalorder %s3282_s21, %s5028_s3  ;;  %p2965_p1 = scmp.lt.u32.totalorder %s2963_s17, %s2958_s8 }
  0x4f   : > { %p2961_p0 = pnand %p2960_p9, %p2959_p8  ;;  %p2967_p11 = scmp.lt.u32.totalorder %s2958_s8, %s3282_s21 }
  0x50   : > { %p2966_p6 = por %p2965_p1, %p2964_p5 }
  0x51   : > { %p2962_p13 = pneg %p2961_p0 }
  0x52   : > { %p2968_p3 = por %p2967_p11, %p2966_p6 }
  0x54   : > { %p2969_p7 = pnand %p2968_p3, %p2962_p13 }
  0x56   : > { %2972 = shalt.err (!%p2969_p7)
}
  0x57   : > { %s2973_s13 = scalar_lea.vmem %s3286_s23, 2048  ;;  %s3084_s22 = smov [#allocation8]  }
  0x58   : > { %p2974_p10 = scmp.ne.s32.totalorder %s3286_s23, %s2973_s13  ;;  %s2978_s16 = sshll.u32 %s3084_s22, 4  ;;  %s2979_s16 = int_to_ptr.vmem [resolvable:$false] %s2978_s16 }
  0x59   : > { %s2980_s15 = scalar_lea.vmem %s2979_s16, 4096  ;;  %p2981_p0 = scmp.lt.s32.totalorder %s3286_s23, %s2979_s16 }
  0x5a   : > { %p2976_p2 = pnand %p2974_p10, %p2960_p9  ;;  %p2982_p5 = scmp.lt.s32.totalorder %s2980_s15, %s2973_s13 }
  0x5c   : > { %p2977_p8 = pneg %p2976_p2  ;;  %p2983_p1 = por %p2982_p5, %p2981_p0 }
  0x5e   : > { %p2984_p6 = pnand %p2983_p1, %p2977_p8 }
  0x60   : > { %2987 = shalt.err (!%p2984_p6)
}
  0x61   : > { %s3085_s8 = smov 256   ;;  %s3086_s10 = smov 128  }
  0x62   : > { %s3087_s17 = smov 8   ;;  %316 = sbr.rel (%p3197_p12) target bundleno = 1180 (0x49c), region = 40 }
  0x63   : > { %2523 = dma.hbm_to_vmem [thread:$0]  (!%p3215_p4), %s3282_s21, 2048, %s3286_s23, %s3293_s24, %s3085_s8, %s3086_s10, %s3087_s17  }
  0x69   : > { %p5128_p9 = scmp.eq.s32.totalorder %s3166_s30, 0 }
  0x6b   : > { %3041 = dma.done.wait (%p5128_p9), [#allocation4], 2048   ;;  %p5129_p13 = pmov %p5128_p9 }
  0x6c   : > { %p5130_p11 = pmov %p5128_p9 }
  0x6d   : > { %3043 = vsyncadd (%p5129_p13), [#allocation4], 4294965248 }
  0x6e   : > { %3045 = dma.done.wait (%p5130_p11), [#allocation7], 1024   ;;  %p5131_p3 = pmov %p5128_p9 }
  0x6f   : > { %s326_s20 = sand.u32 1, %s3166_s30   ;;  %s3333_s21 = sand.u32 1, %s3062_s25  }
  0x70   : > { %3047 = vsyncadd (%p5131_p3), [#allocation7], 4294966272  ;;  %s2341_s14 = sshll.u32 %s3333_s21, 7  ;;  %s327_s23 = scalar_lea.sflag [#allocation4], %s326_s20 }
  0x71   : > { %s3336_s24 = scalar_lea.vmem [#allocation8], %s2341_s14  ;;  %p5132_p12 = scmp.ne.s32.totalorder %s5120_s11, 0 }
  0x73   : > { %3049 = dma.done.wait (%p5132_p12), %s327_s23, 2048  }
  0x74   : > { %3051 = vsyncadd (%p5132_p12), %s327_s23, 4294965248  ;;  %s2342_s18 = sshll.u32 %s3333_s21, 9  ;;  %s2343_s19 = sshll.u32 %s3070_s27, 1 }
  0x75   : > { %p378_p4 = scmp.lt.s32.totalorder %s2343_s19, 3  ;;  %s3350_s16 = scalar_lea.vmem [#allocation9], %s2342_s18 }
  0x76   : > { %p2344_p7 = scmp.ne.s32.totalorder %s3070_s27, 0 }
  0x77   : > { %s5335_s19 = smov (!%p378_p4, %s2343_s19), 3  ;;  %v2595_v0 = vld [vmem:[#allocation6] sm:$0xff] (!%p2344_p7)   ;;  %v2596_v1 = vld [vmem:[#allocation6 + $0x8] sm:$0xff] (!%p2344_p7)   ;;  %v2597_v2 = vld [vmem:[#allocation6 + $0x10] sm:$0xff] (!%p2344_p7)   ;;  %vm825_vm0 = vcmask (!%p2344_p7), 7168   ;;  %v3088_v24 = vmov (!%p2344_p7), -inf  }
  0x78   : > { %s380_s22 = scalar_lea.vmem %s5029_s4, %s5335_s19  ;;  %400 = sbr.rel (%p2344_p7) target bundleno = 414 (0x19e), region = 56  ;;  %2421 = vmatprep.subr.bf16.mxu0 (!%p2344_p7), %v2595_v0  ;;  %2469 = vmatprep.subr.bf16.mxu1 (!%p2344_p7), %v2595_v0  ;;  %v2598_v3 = vld [vmem:[#allocation6 + $0x18] sm:$0xff] (!%p2344_p7)   ;;  %v2603_v4 = vld [vmem:[#allocation3] sm:$0xff] (!%p2344_p7)   ;;  %v2600_v7 = vld [vmem:[#allocation6 + $0x28] sm:$0xff] (!%p2344_p7)   ;;  %826 = vst.msk [vmem:[%s5031_s6] sm:$0xff] (!%p2344_p7), %vm825_vm0, %v3088_v24  ;;  %v3089_v25 = vmov (!%p2344_p7), 0.0  }
  0x79   : > { %2422 = vmatpush3.bf16.msra.mxu0 (!%p2344_p7), %v2595_v0  ;;  %2477 = vmatpush3.bf16.msra.mxu1 (!%p2344_p7), %v2595_v0  ;;  %v2604_v5 = vld [vmem:[#allocation3 + $0x40] sm:$0xff] (!%p2344_p7)   ;;  %v2601_v8 = vld [vmem:[#allocation6 + $0x30] sm:$0xff] (!%p2344_p7)   ;;  %v2602_v9 = vld [vmem:[#allocation6 + $0x38] sm:$0xff] (!%p2344_p7)   ;;  %827 = vst.msk [vmem:[%s5031_s6 + $0x8] sm:$0xff] (!%p2344_p7), %vm825_vm0, %v3088_v24 }
  0x7a   : > { %2423 = vmatprep.subr.bf16.mxu0 (!%p2344_p7), %v2596_v1  ;;  %2470 = vmatprep.subr.bf16.mxu1 (!%p2344_p7), %v2596_v1  ;;  %v2599_v6 = vld [vmem:[#allocation6 + $0x20] sm:$0xff] (!%p2344_p7)   ;;  %v2605_v10 = vld [vmem:[#allocation3 + $0x8] sm:$0xff] (!%p2344_p7)   ;;  %v2607_v12 = vld [vmem:[#allocation3 + $0x10] sm:$0xff] (!%p2344_p7)   ;;  %828 = vst.msk [vmem:[%s5031_s6 + $0x10] sm:$0xff] (!%p2344_p7), %vm825_vm0, %v3088_v24 }
  0x7b   : > { %2437 = vmatprep.mubr.bf16.mxu0 (!%p2344_p7), %v2603_v4  ;;  %2453 = vmatprep.mubr.bf16.mxu1 (!%p2344_p7), %v2604_v5  ;;  %v2606_v11 = vld [vmem:[#allocation3 + $0x48] sm:$0xff] (!%p2344_p7)   ;;  %v2608_v13 = vld [vmem:[#allocation3 + $0x50] sm:$0xff] (!%p2344_p7)   ;;  %v2609_v14 = vld [vmem:[#allocation3 + $0x18] sm:$0xff] (!%p2344_p7)   ;;  %829 = vst.msk [vmem:[%s5031_s6 + $0x18] sm:$0xff] (!%p2344_p7), %vm825_vm0, %v3088_v24 }
  0x7c   : > { %v2610_v15 = vld [vmem:[#allocation3 + $0x58] sm:$0xff] (!%p2344_p7)   ;;  %v2611_v16 = vld [vmem:[#allocation3 + $0x20] sm:$0xff] (!%p2344_p7)   ;;  %v2613_v18 = vld [vmem:[#allocation3 + $0x28] sm:$0xff] (!%p2344_p7)   ;;  %830 = vst.msk [vmem:[%s5031_s6 + $0x20] sm:$0xff] (!%p2344_p7), %vm825_vm0, %v3088_v24 }
  0x7d   : > { %2424 = vmatpush3.bf16.msra.mxu0 (!%p2344_p7), %v2596_v1  ;;  %2478 = vmatpush3.bf16.msra.mxu1 (!%p2344_p7), %v2596_v1  ;;  %v2612_v17 = vld [vmem:[#allocation3 + $0x60] sm:$0xff] (!%p2344_p7)   ;;  %v2614_v19 = vld [vmem:[#allocation3 + $0x68] sm:$0xff] (!%p2344_p7)   ;;  %v2615_v20 = vld [vmem:[#allocation3 + $0x30] sm:$0xff] (!%p2344_p7)   ;;  %831 = vst.msk [vmem:[%s5031_s6 + $0x28] sm:$0xff] (!%p2344_p7), %vm825_vm0, %v3088_v24 }
  0x7e   : > { %2425 = vmatprep.subr.bf16.mxu0 (!%p2344_p7), %v2597_v2  ;;  %2471 = vmatprep.subr.bf16.mxu1 (!%p2344_p7), %v2597_v2  ;;  %v2616_v21 = vld [vmem:[#allocation3 + $0x70] sm:$0xff] (!%p2344_p7)   ;;  %v2617_v22 = vld [vmem:[#allocation3 + $0x38] sm:$0xff] (!%p2344_p7)   ;;  %832 = vst.msk [vmem:[%s5031_s6 + $0x30] sm:$0xff] (!%p2344_p7), %vm825_vm0, %v3088_v24  ;;  %833 = vst.msk [vmem:[%s5031_s6 + $0x38] sm:$0xff] (!%p2344_p7), %vm825_vm0, %v3088_v24 }
  0x7f   : > { %v2618_v23 = vld [vmem:[#allocation3 + $0x78] sm:$0xff]   ;;  %834 = vst.msk [vmem:[%s5031_s6 + $0x40] sm:$0xff] %vm825_vm0, %v3088_v24  ;;  %835 = vst.msk [vmem:[%s5031_s6 + $0x48] sm:$0xff] %vm825_vm0, %v3088_v24  ;;  %v3612_v26 = vld [vmem:[%s5027_s2] ss:$0 sm:$0xff] }
  0x80   : > { %836 = vst.msk [vmem:[%s5031_s6 + $0x50] sm:$0xff] %vm825_vm0, %v3088_v24  ;;  %837 = vst.msk [vmem:[%s5031_s6 + $0x58] sm:$0xff] %vm825_vm0, %v3088_v24 }
  0x81   : > { %2426 = vmatpush3.bf16.msra.mxu0 %v2597_v2  ;;  %2479 = vmatpush3.bf16.msra.mxu1 %v2597_v2  ;;  %838 = vst.msk [vmem:[%s5031_s6 + $0x60] sm:$0xff] %vm825_vm0, %v3088_v24  ;;  %839 = vst.msk [vmem:[%s5031_s6 + $0x68] sm:$0xff] %vm825_vm0, %v3088_v24 }
  0x82   : > { %2427 = vmatprep.subr.bf16.mxu0 %v2598_v3  ;;  %2472 = vmatprep.subr.bf16.mxu1 %v2598_v3  ;;  %840 = vst.msk [vmem:[%s5031_s6 + $0x70] sm:$0xff] %vm825_vm0, %v3088_v24  ;;  %841 = vst.msk [vmem:[%s5031_s6 + $0x78] sm:$0xff] %vm825_vm0, %v3088_v24 }
  0x83   : > { %842 = vst.msk [vmem:[%s5031_s6 + $0x80] sm:$0xff] %vm825_vm0, %v3088_v24  ;;  %843 = vst.msk [vmem:[%s5031_s6 + $0x88] sm:$0xff] %vm825_vm0, %v3088_v24 }
  0x84   : > { %844 = vst.msk [vmem:[%s5031_s6 + $0x90] sm:$0xff] %vm825_vm0, %v3088_v24  ;;  %845 = vst.msk [vmem:[%s5031_s6 + $0x98] sm:$0xff] %vm825_vm0, %v3088_v24 }
  0x85   : > { %2428 = vmatpush3.bf16.msra.mxu0 %v2598_v3  ;;  %2480 = vmatpush3.bf16.msra.mxu1 %v2598_v3  ;;  %846 = vst.msk [vmem:[%s5031_s6 + $0xa0] sm:$0xff] %vm825_vm0, %v3088_v24  ;;  %847 = vst.msk [vmem:[%s5031_s6 + $0xa8] sm:$0xff] %vm825_vm0, %v3088_v24 }
  0x86   : > { %2429 = vmatprep.subr.bf16.mxu0 %v2599_v6  ;;  %2473 = vmatprep.subr.bf16.mxu1 %v2599_v6  ;;  %848 = vst.msk [vmem:[%s5031_s6 + $0xb0] sm:$0xff] %vm825_vm0, %v3088_v24  ;;  %849 = vst.msk [vmem:[%s5031_s6 + $0xb8] sm:$0xff] %vm825_vm0, %v3088_v24 }
  0x87   : > { %850 = vst.msk [vmem:[%s5031_s6 + $0xc0] sm:$0xff] %vm825_vm0, %v3088_v24  ;;  %851 = vst.msk [vmem:[%s5031_s6 + $0xc8] sm:$0xff] %vm825_vm0, %v3088_v24 }
  0x88   : > { %852 = vst.msk [vmem:[%s5031_s6 + $0xd0] sm:$0xff] %vm825_vm0, %v3088_v24  ;;  %853 = vst.msk [vmem:[%s5031_s6 + $0xd8] sm:$0xff] %vm825_vm0, %v3088_v24 }
  0x89   : > { %2430 = vmatpush3.bf16.msra.mxu0 %v2599_v6  ;;  %2481 = vmatpush3.bf16.msra.mxu1 %v2599_v6  ;;  %854 = vst.msk [vmem:[%s5031_s6 + $0xe0] sm:$0xff] %vm825_vm0, %v3088_v24  ;;  %855 = vst.msk [vmem:[%s5031_s6 + $0xe8] sm:$0xff] %vm825_vm0, %v3088_v24 }
  0x8a   : > { %2431 = vmatprep.subr.bf16.mxu0 %v2600_v7  ;;  %2474 = vmatprep.subr.bf16.mxu1 %v2600_v7  ;;  %856 = vst.msk [vmem:[%s5031_s6 + $0xf0] sm:$0xff] %vm825_vm0, %v3088_v24  ;;  %857 = vst.msk [vmem:[%s5031_s6 + $0xf8] sm:$0xff] %vm825_vm0, %v3088_v24 }
  0x8b   : > { %858 = vst.msk [vmem:[%s5032_s7] sm:$0xff] %vm825_vm0, %v3089_v25  ;;  %859 = vst.msk [vmem:[%s5032_s7 + $0x8] sm:$0xff] %vm825_vm0, %v3089_v25 }
  0x8c   : > { %860 = vst.msk [vmem:[%s5032_s7 + $0x10] sm:$0xff] %vm825_vm0, %v3089_v25  ;;  %861 = vst.msk [vmem:[%s5032_s7 + $0x18] sm:$0xff] %vm825_vm0, %v3089_v25 }
  0x8d   : > { %2432 = vmatpush3.bf16.msra.mxu0 %v2600_v7  ;;  %2482 = vmatpush3.bf16.msra.mxu1 %v2600_v7  ;;  %862 = vst.msk [vmem:[%s5032_s7 + $0x20] sm:$0xff] %vm825_vm0, %v3089_v25  ;;  %863 = vst.msk [vmem:[%s5032_s7 + $0x28] sm:$0xff] %vm825_vm0, %v3089_v25 }
  0x8e   : > { %2433 = vmatprep.subr.bf16.mxu0 %v2601_v8  ;;  %2475 = vmatprep.subr.bf16.mxu1 %v2601_v8  ;;  %864 = vst.msk [vmem:[%s5032_s7 + $0x30] sm:$0xff] %vm825_vm0, %v3089_v25  ;;  %865 = vst.msk [vmem:[%s5032_s7 + $0x38] sm:$0xff] %vm825_vm0, %v3089_v25 }
  0x8f   : > { %866 = vst.msk [vmem:[%s5032_s7 + $0x40] sm:$0xff] %vm825_vm0, %v3089_v25  ;;  %867 = vst.msk [vmem:[%s5032_s7 + $0x48] sm:$0xff] %vm825_vm0, %v3089_v25 }
  0x90   : > { %868 = vst.msk [vmem:[%s5032_s7 + $0x50] sm:$0xff] %vm825_vm0, %v3089_v25  ;;  %869 = vst.msk [vmem:[%s5032_s7 + $0x58] sm:$0xff] %vm825_vm0, %v3089_v25 }
  0x91   : > { %2434 = vmatpush3.bf16.msra.mxu0 %v2601_v8  ;;  %2483 = vmatpush3.bf16.msra.mxu1 %v2601_v8  ;;  %870 = vst.msk [vmem:[%s5032_s7 + $0x60] sm:$0xff] %vm825_vm0, %v3089_v25  ;;  %871 = vst.msk [vmem:[%s5032_s7 + $0x68] sm:$0xff] %vm825_vm0, %v3089_v25 }
  0x92   : > { %2435 = vmatprep.subr.bf16.mxu0 %v2602_v9  ;;  %2476 = vmatprep.subr.bf16.mxu1 %v2602_v9  ;;  %872 = vst.msk [vmem:[%s5032_s7 + $0x70] sm:$0xff] %vm825_vm0, %v3089_v25  ;;  %873 = vst.msk [vmem:[%s5032_s7 + $0x78] sm:$0xff] %vm825_vm0, %v3089_v25 }
  0x93   : > { %874 = vst.msk [vmem:[%s5032_s7 + $0x80] sm:$0xff] %vm825_vm0, %v3089_v25  ;;  %875 = vst.msk [vmem:[%s5032_s7 + $0x88] sm:$0xff] %vm825_vm0, %v3089_v25 }
  0x94   : > { %876 = vst.msk [vmem:[%s5032_s7 + $0x90] sm:$0xff] %vm825_vm0, %v3089_v25  ;;  %877 = vst.msk [vmem:[%s5032_s7 + $0x98] sm:$0xff] %vm825_vm0, %v3089_v25 }
  0x95   : > { %2436 = vmatpush3.bf16.msra.mxu0 %v2602_v9  ;;  %2484 = vmatpush3.bf16.msra.mxu1 %v2602_v9  ;;  %878 = vst.msk [vmem:[%s5032_s7 + $0xa0] sm:$0xff] %vm825_vm0, %v3089_v25  ;;  %879 = vst.msk [vmem:[%s5032_s7 + $0xa8] sm:$0xff] %vm825_vm0, %v3089_v25 }
  0x96   : > { %880 = vst.msk [vmem:[%s5032_s7 + $0xb0] sm:$0xff] %vm825_vm0, %v3089_v25  ;;  %881 = vst.msk [vmem:[%s5032_s7 + $0xb8] sm:$0xff] %vm825_vm0, %v3089_v25 }
  0x97   : > { %882 = vst.msk [vmem:[%s5032_s7 + $0xc0] sm:$0xff] %vm825_vm0, %v3089_v25  ;;  %883 = vst.msk [vmem:[%s5032_s7 + $0xc8] sm:$0xff] %vm825_vm0, %v3089_v25 }
  0x98   : > { %2438 = vmatmul.mubr.bf16.vlgmr.msra.gmra.mrb[0].mxu0 %v2605_v10  ;;  %2454 = vmatmul.mubr.bf16.vlgmr.msra.gmra.mrb[0].mxu1 %v2606_v11  ;;  %884 = vst.msk [vmem:[%s5032_s7 + $0xd0] sm:$0xff] %vm825_vm0, %v3089_v25  ;;  %885 = vst.msk [vmem:[%s5032_s7 + $0xd8] sm:$0xff] %vm825_vm0, %v3089_v25 }
  0x99   : > { %2441 = vmatprep.mubr.bf16.mxu0 %v2607_v12  ;;  %2457 = vmatprep.mubr.bf16.mxu1 %v2608_v13  ;;  %886 = vst.msk [vmem:[%s5032_s7 + $0xe0] sm:$0xff] %vm825_vm0, %v3089_v25  ;;  %887 = vst.msk [vmem:[%s5032_s7 + $0xe8] sm:$0xff] %vm825_vm0, %v3089_v25 }
  0x9a   : > { %888 = vst.msk [vmem:[%s5032_s7 + $0xf0] sm:$0xff] %vm825_vm0, %v3089_v25  ;;  %889 = vst.msk [vmem:[%s5032_s7 + $0xf8] sm:$0xff] %vm825_vm0, %v3089_v25 }
  0xa0   : > { %2442 = vmatmul.mubr.bf16.gmra.mrb[4].mxu0 %v2609_v14  ;;  %2458 = vmatmul.mubr.bf16.gmra.mrb[4].mxu1 %v2610_v15 }
  0xa1   : > { %2445 = vmatprep.mubr.bf16.mxu0 %v2611_v16  ;;  %2461 = vmatprep.mubr.bf16.mxu1 %v2612_v17 }
  0xa8   : > { %2446 = vmatmul.mubr.bf16.gmra.mrb[8].mxu0 %v2613_v18  ;;  %2462 = vmatmul.mubr.bf16.gmra.mrb[8].mxu1 %v2614_v19 }
  0xa9   : > { %2449 = vmatprep.mubr.bf16.mxu0 %v2615_v20  ;;  %2465 = vmatprep.mubr.bf16.mxu1 %v2616_v21 }
  0xb0   : > { %2450 = vmatmul.mubr.bf16.gmra.mrb[12].mxu0 %v2617_v22  ;;  %2466 = vmatmul.mubr.bf16.gmra.mrb[12].mxu1 %v2618_v23 }
 0x16b   : > { %v2439_v27 = vpop.f32.mrb[0].mxu0  ;;  %v2455_v28 = vpop.f32.mrb[0].mxu1 }
 0x16c   : > { %v643_v29 = vadd.f32 %v2439_v27, %v3612_v26  ;;  %v707_v30 = vadd.f32 %v2455_v28, %v3612_v26  ;;  %v634_v31 = vpop.f32.mrb[1].mxu0  ;;  %v698_v32 = vpop.f32.mrb[1].mxu1 }
 0x16d   : > { %v635_v33 = vadd.f32 %v3612_v26, %v634_v31  ;;  %v699_v34 = vadd.f32 %v3612_v26, %v698_v32  ;;  %v2440_v35 = vpop.f32.mrb[2].mxu0  ;;  %v2456_v36 = vpop.f32.mrb[2].mxu1 }
 0x16e   : > { %2619 = vtanh.f32 %v643_v29  ;;  %v646_v37 = vadd.f32 %v2440_v35, %v3612_v26  ;;  %v637_v38 = vpop.f32.mrb[3].mxu0  ;;  %v701_v39 = vpop.f32.mrb[3].mxu1  ;;  %v710_v40 = vadd.f32 %v2456_v36, %v3612_v26 }
 0x16f   : > { %2621 = vtanh.f32 %v707_v30  ;;  %v638_v41 = vadd.f32 %v3612_v26, %v637_v38  ;;  %v702_v42 = vadd.f32 %v3612_v26, %v701_v39 }
 0x170   : > { %2623 = vtanh.f32 %v635_v33 }
 0x171   : > { %2625 = vtanh.f32 %v699_v34 }
 0x172   : > { %2627 = vtanh.f32 %v646_v37 }
 0x173   : > { %2629 = vtanh.f32 %v710_v40  ;;  %v2443_v43 = vpop.f32.mrb[4].mxu0  ;;  %v2459_v44 = vpop.f32.mrb[4].mxu1 }
 0x174   : > { %2631 = vtanh.f32 %v638_v41  ;;  %v659_v45 = vadd.f32 %v2443_v43, %v3612_v26  ;;  %v723_v46 = vadd.f32 %v2459_v44, %v3612_v26  ;;  %v650_v47 = vpop.f32.mrb[5].mxu0  ;;  %v714_v48 = vpop.f32.mrb[5].mxu1 }
 0x175   : > { %2633 = vtanh.f32 %v702_v42  ;;  %v651_v49 = vadd.f32 %v3612_v26, %v650_v47  ;;  %v715_v50 = vadd.f32 %v3612_v26, %v714_v48  ;;  %v2444_v51 = vpop.f32.mrb[6].mxu0  ;;  %v2460_v52 = vpop.f32.mrb[6].mxu1 }
 0x176   : > { %2635 = vtanh.f32 %v659_v45  ;;  %v662_v53 = vadd.f32 %v2444_v51, %v3612_v26  ;;  %v653_v54 = vpop.f32.mrb[7].mxu0  ;;  %v717_v55 = vpop.f32.mrb[7].mxu1  ;;  %v726_v56 = vadd.f32 %v2460_v52, %v3612_v26 }
 0x177   : > { %2637 = vtanh.f32 %v723_v46  ;;  %v654_v58 = vadd.f32 %v3612_v26, %v653_v54  ;;  %v718_v60 = vadd.f32 %v3612_v26, %v717_v55 }
 0x178   : > { %v2620_v57 = vpop.eup %2619  ;;  %2639 = vtanh.f32 %v651_v49 }
 0x179   : > { %v2622_v59 = vpop.eup %2621  ;;  %2641 = vtanh.f32 %v715_v50 }
 0x17a   : > { %v2624_v61 = vpop.eup %2623  ;;  %2643 = vtanh.f32 %v662_v53 }
 0x17b   : > { %v2626_v62 = vpop.eup %2625  ;;  %2645 = vtanh.f32 %v726_v56  ;;  %v2447_v63 = vpop.f32.mrb[8].mxu0 }
 0x17c   : > { %v2463_v0 = vpop.f32.mrb[8].mxu1  ;;  %v2628_v1 = vpop.eup %2627  ;;  %2647 = vtanh.f32 %v654_v58  ;;  %v675_v2 = vadd.f32 %v2447_v63, %v3612_v26 }
 0x17d   : > { %v739_v3 = vadd.f32 %v2463_v0, %v3612_v26  ;;  %v666_v4 = vpop.f32.mrb[9].mxu0  ;;  %v730_v5 = vpop.f32.mrb[9].mxu1  ;;  %v794_v7 = vpack.c.bf16 %v2628_v1, %v2620_v57  ;;  %2649 = vtanh.f32 %v718_v60 }
 0x17e   : > { %v2630_v6 = vpop.eup %2629  ;;  %v667_v8 = vadd.f32 %v3612_v26, %v666_v4  ;;  %v731_v9 = vadd.f32 %v3612_v26, %v730_v5  ;;  %v2448_v10 = vpop.f32.mrb[10].mxu0  ;;  %2651 = vtanh.f32 %v675_v2 }
 0x17f   : > { %v2464_v11 = vpop.f32.mrb[10].mxu1  ;;  %v2632_v12 = vpop.eup %2631  ;;  %v802_v13 = vpack.c.bf16 %v2630_v6, %v2622_v59  ;;  %v678_v14 = vadd.f32 %v2448_v10, %v3612_v26  ;;  %810 = vst [vmem:[#allocation2 + $0x8] sm:$0xff] %v794_v7  ;;  %2653 = vtanh.f32 %v739_v3 }
 0x180   : > { %v669_v15 = vpop.f32.mrb[11].mxu0  ;;  %v733_v16 = vpop.f32.mrb[11].mxu1  ;;  %v793_v18 = vpack.c.bf16 %v2632_v12, %v2624_v61  ;;  %v742_v19 = vadd.f32 %v2464_v11, %v3612_v26  ;;  %2655 = vtanh.f32 %v667_v8 }
 0x181   : > { %v2634_v17 = vpop.eup %2633  ;;  %818 = vst [vmem:[#allocation2 + $0x48] sm:$0xff] %v802_v13  ;;  %v670_v22 = vadd.f32 %v3612_v26, %v669_v15  ;;  %2657 = vtanh.f32 %v731_v9  ;;  %v734_v24 = vadd.f32 %v3612_v26, %v733_v16 }
 0x182   : > { %v2636_v20 = vpop.eup %2635  ;;  %v801_v21 = vpack.c.bf16 %v2634_v17, %v2626_v62  ;;  %809 = vst [vmem:[#allocation2] sm:$0xff] %v793_v18  ;;  %2659 = vtanh.f32 %v678_v14 }
 0x183   : > { %v2638_v23 = vpop.eup %2637  ;;  %2661 = vtanh.f32 %v742_v19  ;;  %v2451_v28 = vpop.f32.mrb[12].mxu0 }
 0x184   : > { %v2640_v25 = vpop.eup %2639  ;;  %817 = vst [vmem:[#allocation2 + $0x40] sm:$0xff] %v801_v21  ;;  %v2467_v29 = vpop.f32.mrb[12].mxu1  ;;  %2663 = vtanh.f32 %v670_v22  ;;  %v691_v31 = vadd.f32 %v2451_v28, %v3612_v26 }
 0x185   : > { %v2642_v27 = vpop.eup %2641  ;;  %v755_v32 = vadd.f32 %v2467_v29, %v3612_v26  ;;  %v682_v33 = vpop.f32.mrb[13].mxu0  ;;  %2665 = vtanh.f32 %v734_v24 }
 0x186   : > { %v2644_v30 = vpop.eup %2643  ;;  %v746_v34 = vpop.f32.mrb[13].mxu1  ;;  %v683_v37 = vadd.f32 %v3612_v26, %v682_v33  ;;  %2667 = vtanh.f32 %v691_v31 }
 0x187   : > { %v2646_v35 = vpop.eup %2645  ;;  %v796_v36 = vpack.c.bf16 %v2644_v30, %v2636_v20  ;;  %v747_v38 = vadd.f32 %v3612_v26, %v746_v34  ;;  %v2452_v39 = vpop.f32.mrb[14].mxu0  ;;  %2669 = vtanh.f32 %v755_v32 }
 0x188   : > { %v2468_v40 = vpop.f32.mrb[14].mxu1  ;;  %v2648_v41 = vpop.eup %2647  ;;  %v804_v42 = vpack.c.bf16 %v2646_v35, %v2638_v23  ;;  %v694_v43 = vadd.f32 %v2452_v39, %v3612_v26  ;;  %2671 = vtanh.f32 %v683_v37 }
 0x189   : > { %v685_v44 = vpop.f32.mrb[15].mxu0  ;;  %v749_v45 = vpop.f32.mrb[15].mxu1  ;;  %812 = vst [vmem:[#allocation2 + $0x18] sm:$0xff] %v796_v36  ;;  %v795_v47 = vpack.c.bf16 %v2648_v41, %v2640_v25  ;;  %v758_v48 = vadd.f32 %v2468_v40, %v3612_v26  ;;  %2673 = vtanh.f32 %v747_v38 }
 0x18a   : > { %v2650_v46 = vpop.eup %2649  ;;  %820 = vst [vmem:[#allocation2 + $0x58] sm:$0xff] %v804_v42  ;;  %v686_v51 = vadd.f32 %v3612_v26, %v685_v44  ;;  %v750_v53 = vadd.f32 %v3612_v26, %v749_v45  ;;  %2675 = vtanh.f32 %v694_v43 }
 0x18b   : > { %v2652_v49 = vpop.eup %2651  ;;  %v803_v50 = vpack.c.bf16 %v2650_v46, %v2642_v27  ;;  %811 = vst [vmem:[#allocation2 + $0x10] sm:$0xff] %v795_v47  ;;  %2677 = vtanh.f32 %v758_v48 }
 0x18c   : > { %v2654_v52 = vpop.eup %2653  ;;  %2679 = vtanh.f32 %v686_v51 }
 0x18d   : > { %v2656_v54 = vpop.eup %2655  ;;  %819 = vst [vmem:[#allocation2 + $0x50] sm:$0xff] %v803_v50  ;;  %2681 = vtanh.f32 %v750_v53 }
 0x18e   : > { %v2658_v55 = vpop.eup %2657 }
 0x18f   : > { %v2660_v56 = vpop.eup %2659 }
 0x190   : > { %v2662_v57 = vpop.eup %2661  ;;  %v798_v58 = vpack.c.bf16 %v2660_v56, %v2652_v49 }
 0x191   : > { %v2664_v59 = vpop.eup %2663  ;;  %v806_v60 = vpack.c.bf16 %v2662_v57, %v2654_v52 }
 0x192   : > { %v2666_v61 = vpop.eup %2665  ;;  %814 = vst [vmem:[#allocation2 + $0x28] sm:$0xff] %v798_v58  ;;  %v797_v62 = vpack.c.bf16 %v2664_v59, %v2656_v54 }
 0x193   : > { %v2668_v63 = vpop.eup %2667  ;;  %822 = vst [vmem:[#allocation2 + $0x68] sm:$0xff] %v806_v60  ;;  %v805_v0 = vpack.c.bf16 %v2666_v61, %v2658_v55 }
 0x194   : > { %v2670_v1 = vpop.eup %2669  ;;  %813 = vst [vmem:[#allocation2 + $0x20] sm:$0xff] %v797_v62 }
 0x195   : > { %v2672_v26 = vpop.eup %2671  ;;  %821 = vst [vmem:[#allocation2 + $0x60] sm:$0xff] %v805_v0 }
 0x196   : > { %v2674_v2 = vpop.eup %2673 }
 0x197   : > { %v2676_v3 = vpop.eup %2675 }
 0x198   : > { %v2678_v4 = vpop.eup %2677  ;;  %v800_v5 = vpack.c.bf16 %v2676_v3, %v2668_v63 }
 0x199   : > { %v2680_v6 = vpop.eup %2679  ;;  %v808_v7 = vpack.c.bf16 %v2678_v4, %v2670_v1 }
 0x19a   : > { %v2682_v8 = vpop.eup %2681  ;;  %816 = vst [vmem:[#allocation2 + $0x38] sm:$0xff] %v800_v5  ;;  %v799_v9 = vpack.c.bf16 %v2680_v6, %v2672_v26 }
 0x19b   : > { %824 = vst [vmem:[#allocation2 + $0x78] sm:$0xff] %v808_v7  ;;  %v807_v10 = vpack.c.bf16 %v2682_v8, %v2674_v2 }
 0x19c   : > { %815 = vst [vmem:[#allocation2 + $0x30] sm:$0xff] %v799_v9 }
 0x19d   : > { %823 = vst [vmem:[#allocation2 + $0x70] sm:$0xff] %v807_v10 }
 0x19e PF: > { %v2685_v11 = vld [vmem:[%s3336_s24 + $0x4] ss:$8 sps:$4 sm:$0xff]   ;;  %v2687_v12 = vld [vmem:[%s3336_s24] ss:$8 sps:$4 sm:$0xff]   ;;  %v3090_v13 = vmov 0   ;;  %v892_v33 = vld [vmem:[#allocation2 + $0x10] sm:$0xff]  ;;  %v924_v45 = vlaneseq }
 0x19f   : > { %1046 = vmatprep.mubr.bf16.mxu0 %v3090_v13  ;;  %1126 = vmatprep.mubr.bf16.mxu1 %v3090_v13  ;;  %v2688_v14 = vld [vmem:[%s3336_s24 + $0x14] ss:$8 sps:$4 sm:$0xff]   ;;  %v2690_v15 = vld [vmem:[%s3336_s24 + $0x10] ss:$8 sps:$4 sm:$0xff]   ;;  %v2691_v16 = vld [vmem:[%s3336_s24 + $0x24] ss:$8 sps:$4 sm:$0xff]  }
 0x1a0   : > { %1014 = vmatprep.subr.bf16.mxu0 %v2685_v11  ;;  %2485 = vmatprep.subr.bf16.mxu1 %v2685_v11  ;;  %v2693_v17 = vld [vmem:[%s3336_s24 + $0x20] ss:$8 sps:$4 sm:$0xff]   ;;  %v2694_v18 = vld [vmem:[%s3336_s24 + $0x34] ss:$8 sps:$4 sm:$0xff]   ;;  %v2696_v19 = vld [vmem:[%s3336_s24 + $0x30] ss:$8 sps:$4 sm:$0xff]  }
 0x1a1   : > { %1015 = vmatpush1.bf16.msra.mxu0 %v2687_v12  ;;  %2493 = vmatpush1.bf16.msra.mxu1 %v2687_v12  ;;  %v2697_v20 = vld [vmem:[%s3336_s24 + $0x44] ss:$8 sps:$4 sm:$0xff]   ;;  %v2699_v21 = vld [vmem:[%s3336_s24 + $0x40] ss:$8 sps:$4 sm:$0xff]   ;;  %v2700_v22 = vld [vmem:[%s3336_s24 + $0x54] ss:$8 sps:$4 sm:$0xff]  }
 0x1a2   : > { %1016 = vmatprep.subr.bf16.mxu0 %v2688_v14  ;;  %2486 = vmatprep.subr.bf16.mxu1 %v2688_v14  ;;  %v2702_v23 = vld [vmem:[%s3336_s24 + $0x50] ss:$8 sps:$4 sm:$0xff]   ;;  %v2703_v24 = vld [vmem:[%s3336_s24 + $0x64] ss:$8 sps:$4 sm:$0xff]   ;;  %v2705_v25 = vld [vmem:[%s3336_s24 + $0x60] ss:$8 sps:$4 sm:$0xff]  }
 0x1a3   : > { %2683 = vset.pattern.permute.xlu0 %v3090_v13  ;;  %2684 = vset.pattern.permute.xlu1 %v3090_v13  ;;  %v2706_v27 = vld [vmem:[%s3336_s24 + $0x74] ss:$8 sps:$4 sm:$0xff]   ;;  %v2708_v28 = vld [vmem:[%s3336_s24 + $0x70] ss:$8 sps:$4 sm:$0xff]   ;;  %v890_v29 = vld [vmem:[#allocation2] sm:$0xff]  ;;  %v925_v46 = vshrl.u32 %v924_v45, 7 }
 0x1a4   : > { %v898_v30 = vld [vmem:[#allocation2 + $0x40] sm:$0xff]  ;;  %v891_v31 = vld [vmem:[#allocation2 + $0x8] sm:$0xff]  ;;  %v900_v34 = vld [vmem:[#allocation2 + $0x50] sm:$0xff]  ;;  %vm2071_vm1 = vcmask 7168   ;;  %s2396_s13 = sshll.u32 %s3070_s27, 8  ;;  %s5225_s8 = sld [smem:[#allocation94_spill]] }
 0x1a5   : > { %1017 = vmatpush1.bf16.msra.mxu0 %v2690_v15  ;;  %2494 = vmatpush1.bf16.msra.mxu1 %v2690_v15  ;;  %v899_v32 = vld [vmem:[#allocation2 + $0x48] sm:$0xff]  ;;  %v893_v35 = vld [vmem:[#allocation2 + $0x18] sm:$0xff]  ;;  %v894_v37 = vld [vmem:[#allocation2 + $0x20] sm:$0xff]  ;;  %v926_v47 = vsub.s32 0, %v925_v46  ;;  %v930_v49 = vsub.s32 1, %v925_v46  ;;  %s2163_s17 = sshll.u32 %s3350_s16, 4  ;;  %s4656_s17 = int_to_ptr.vmem [resolvable:$true] %s2163_s17 }
 0x1a6   : > { %1018 = vmatprep.subr.bf16.mxu0 %v2691_v16  ;;  %2487 = vmatprep.subr.bf16.mxu1 %v2691_v16  ;;  %v901_v36 = vld [vmem:[#allocation2 + $0x58] sm:$0xff]  ;;  %v902_v38 = vld [vmem:[#allocation2 + $0x60] sm:$0xff]  ;;  %v895_v39 = vld [vmem:[#allocation2 + $0x28] sm:$0xff]  ;;  %s2137_s20 = scalar_lea.sflag [#allocation5], %s3333_s21  ;;  %s2988_s14 = scalar_lea.vmem %s4656_s17, 8192 }
 0x1a7   : > { %v903_v40 = vld [vmem:[#allocation2 + $0x68] sm:$0xff]  ;;  %v896_v41 = vld [vmem:[#allocation2 + $0x30] sm:$0xff]  ;;  %v897_v43 = vld [vmem:[#allocation2 + $0x38] sm:$0xff]  ;;  %p2989_p10 = scmp.ne.s32.totalorder %s4656_s17, %s2988_s14  ;;  %p5226_p2 = scmp.ne.s32.totalorder %s5121_s12, 0 }
 0x1a8   : > { %v904_v42 = vld [vmem:[#allocation2 + $0x70] sm:$0xff]  ;;  %v905_v44 = vld [vmem:[#allocation2 + $0x78] sm:$0xff]  ;;  %v922_v48 = vld [vmem:[%s380_s22] sm:$0x3]  ;;  %s3091_s23 = smov [#allocation9]  }
 0x1a9   : > { %1019 = vmatpush1.bf16.msra.mxu0 %v2693_v17  ;;  %2495 = vmatpush1.bf16.msra.mxu1 %v2693_v17  ;;  %v3685_v50 = vrot.slane %v922_v48, %v926_v47  ;;  %v3687_v51 = vrot.slane %v922_v48, %v930_v49  ;;  %p2990_p8 = pnand %p2989_p10, %p5226_p2  ;;  %s2992_s18 = sshll.u32 %s3091_s23, 4  ;;  %s2993_s18 = int_to_ptr.vmem [resolvable:$false] %s2992_s18 }
 0x1aa   : > { %1020 = vmatprep.subr.bf16.mxu0 %v2694_v18  ;;  %2488 = vmatprep.subr.bf16.mxu1 %v2694_v18  ;;  %s4653_s10 = scalar_lea.hbm %s5225_s8, %s2396_s13  ;;  %s2994_s27 = scalar_lea.vmem %s2993_s18, 16384 }
 0x1ab   : > { %p2991_p0 = pneg %p2990_p8  ;;  %p2995_p5 = scmp.lt.s32.totalorder %s4656_s17, %s2993_s18 }
 0x1ac   : > { %p2996_p1 = scmp.lt.s32.totalorder %s2994_s27, %s2988_s14 }
 0x1ad   : > { %1021 = vmatpush1.bf16.msra.mxu0 %v2696_v19  ;;  %2496 = vmatpush1.bf16.msra.mxu1 %v2696_v19 }
 0x1ae   : > { %1022 = vmatprep.subr.bf16.mxu0 %v2697_v20  ;;  %2489 = vmatprep.subr.bf16.mxu1 %v2697_v20  ;;  %p2997_p6 = por %p2996_p1, %p2995_p5 }
 0x1b0   : > { %p2998_p9 = pnand %p2997_p6, %p2991_p0 }
 0x1b1   : > { %1023 = vmatpush1.bf16.msra.mxu0 %v2699_v21  ;;  %2497 = vmatpush1.bf16.msra.mxu1 %v2699_v21 }
 0x1b2   : > { %1024 = vmatprep.subr.bf16.mxu0 %v2700_v22  ;;  %2490 = vmatprep.subr.bf16.mxu1 %v2700_v22 }
 0x1b5   : > { %1025 = vmatpush1.bf16.msra.mxu0 %v2702_v23  ;;  %2498 = vmatpush1.bf16.msra.mxu1 %v2702_v23 }
 0x1b6   : > { %1026 = vmatprep.subr.bf16.mxu0 %v2703_v24  ;;  %2491 = vmatprep.subr.bf16.mxu1 %v2703_v24 }
 0x1b9   : > { %1027 = vmatpush1.bf16.msra.mxu0 %v2705_v25  ;;  %2499 = vmatpush1.bf16.msra.mxu1 %v2705_v25 }
 0x1ba   : > { %1028 = vmatprep.subr.bf16.mxu0 %v2706_v27  ;;  %2492 = vmatprep.subr.bf16.mxu1 %v2706_v27 }
 0x1bd   : > { %1029 = vmatpush1.bf16.msra.mxu0 %v2708_v28  ;;  %2500 = vmatpush1.bf16.msra.mxu1 %v2708_v28 }
 0x1c0   : > { %1047 = vmatmul.mubr.bf16.vlgmr.msra.gmra.mrb[0].mxu0 %v890_v29  ;;  %1127 = vmatmul.mubr.bf16.vlgmr.msra.gmra.mrb[0].mxu1 %v898_v30 }
 0x1c1   : > { %1056 = vmatprep.mubr.bf16.mxu0 %v3090_v13  ;;  %1136 = vmatprep.mubr.bf16.mxu1 %v3090_v13 }
 0x1c8   : > { %1057 = vmatmul.mubr.bf16.gmra.mrb[4].mxu0 %v891_v31  ;;  %1137 = vmatmul.mubr.bf16.gmra.mrb[4].mxu1 %v899_v32 }
 0x1c9   : > { %1066 = vmatprep.mubr.bf16.mxu0 %v3090_v13  ;;  %1146 = vmatprep.mubr.bf16.mxu1 %v3090_v13 }
 0x1d0   : > { %1067 = vmatmul.mubr.bf16.gmra.mrb[8].mxu0 %v892_v33  ;;  %1147 = vmatmul.mubr.bf16.gmra.mrb[8].mxu1 %v900_v34 }
 0x1d1   : > { %1076 = vmatprep.mubr.bf16.mxu0 %v3090_v13  ;;  %1156 = vmatprep.mubr.bf16.mxu1 %v3090_v13 }
 0x1d8   : > { %1077 = vmatmul.mubr.bf16.gmra.mrb[12].mxu0 %v893_v35  ;;  %1157 = vmatmul.mubr.bf16.gmra.mrb[12].mxu1 %v901_v36 }
 0x1d9   : > { %1086 = vmatprep.mubr.bf16.mxu0 %v3090_v13  ;;  %1166 = vmatprep.mubr.bf16.mxu1 %v3090_v13 }
 0x1e0   : > { %1087 = vmatmul.mubr.bf16.gmra.mrb[16].mxu0 %v894_v37  ;;  %1167 = vmatmul.mubr.bf16.gmra.mrb[16].mxu1 %v902_v38 }
 0x1e1   : > { %1096 = vmatprep.mubr.bf16.mxu0 %v3090_v13  ;;  %1176 = vmatprep.mubr.bf16.mxu1 %v3090_v13 }
 0x1e8   : > { %1097 = vmatmul.mubr.bf16.gmra.mrb[20].mxu0 %v895_v39  ;;  %1177 = vmatmul.mubr.bf16.gmra.mrb[20].mxu1 %v903_v40 }
 0x1e9   : > { %1106 = vmatprep.mubr.bf16.mxu0 %v3090_v13  ;;  %1186 = vmatprep.mubr.bf16.mxu1 %v3090_v13 }
 0x1f0   : > { %1107 = vmatmul.mubr.bf16.gmra.mrb[24].mxu0 %v896_v41  ;;  %1187 = vmatmul.mubr.bf16.gmra.mrb[24].mxu1 %v904_v42 }
 0x1f1   : > { %1116 = vmatprep.mubr.bf16.mxu0 %v3090_v13  ;;  %1196 = vmatprep.mubr.bf16.mxu1 %v3090_v13 }
 0x1f8   : > { %1117 = vmatmul.mubr.bf16.gmra.mrb[28].mxu0 %v897_v43  ;;  %1197 = vmatmul.mubr.bf16.gmra.mrb[28].mxu1 %v905_v44 }
 0x293   : > { %v1048_v52 = vpop.f32.mrb[0].mxu0  ;;  %v1128_v53 = vpop.f32.mrb[0].mxu1 }
 0x294   : > { %v3690_v54 = vadd.f32 %v1048_v52, %v3685_v50  ;;  %v1050_v55 = vpop.f32.mrb[1].mxu0  ;;  %v3693_v56 = vadd.f32 %v1128_v53, %v3685_v50  ;;  %v1130_v57 = vpop.f32.mrb[1].mxu1 }
 0x295   : > { %v3696_v58 = vadd.f32 %v1050_v55, %v3687_v51  ;;  %v1052_v59 = vpop.f32.mrb[2].mxu0  ;;  %v3699_v60 = vadd.f32 %v1130_v57, %v3687_v51  ;;  %v1132_v61 = vpop.f32.mrb[2].mxu1 }
 0x296   : > { %1207 = vst [vmem:[%s3350_s16] sm:$0xff] %v3690_v54  ;;  %1239 = vst [vmem:[%s3350_s16 + $0x100] sm:$0xff] %v3693_v56  ;;  %v3706_v62 = vadd.f32 %v1052_v59, %v3685_v50  ;;  %v1054_v63 = vpop.f32.mrb[3].mxu0  ;;  %v3709_v0 = vadd.f32 %v1132_v61, %v3685_v50  ;;  %v1134_v1 = vpop.f32.mrb[3].mxu1 }
 0x297   : > { %1208 = vst [vmem:[%s3350_s16 + $0x8] sm:$0xff] %v3696_v58  ;;  %1240 = vst [vmem:[%s3350_s16 + $0x108] sm:$0xff] %v3699_v60  ;;  %v3716_v26 = vadd.f32 %v1054_v63, %v3687_v51  ;;  %v3719_v2 = vadd.f32 %v1134_v1, %v3687_v51  ;;  %v1303_v3 = vmax.f32 %v3690_v54, %v3696_v58 }
 0x298   : > { %1209 = vst [vmem:[%s3350_s16 + $0x10] sm:$0xff] %v3706_v62  ;;  %1241 = vst [vmem:[%s3350_s16 + $0x110] sm:$0xff] %v3709_v0  ;;  %v1351_v5 = vmax.f32 %v3693_v56, %v3699_v60 }
 0x299   : > { %1210 = vst [vmem:[%s3350_s16 + $0x18] sm:$0xff] %v3716_v26  ;;  %1242 = vst [vmem:[%s3350_s16 + $0x118] sm:$0xff] %v3719_v2  ;;  %1304 = vmax.xlane.f32.xlu0 %v1303_v3  ;;  %v1354_v4 = vmax.f32 %v3709_v0, %v3719_v2  ;;  %v1306_v22 = vmax.f32 %v3706_v62, %v3716_v26 }
 0x29b   : > { %v1058_v6 = vpop.f32.mrb[4].mxu0  ;;  %1355 = vmax.xlane.f32.xlu1 %v1354_v4  ;;  %v1138_v7 = vpop.f32.mrb[4].mxu1 }
 0x29c   : > { %v3736_v8 = vadd.f32 %v1058_v6, %v3685_v50  ;;  %v1060_v9 = vpop.f32.mrb[5].mxu0  ;;  %v3739_v10 = vadd.f32 %v1138_v7, %v3685_v50  ;;  %v1140_v11 = vpop.f32.mrb[5].mxu1 }
 0x29d   : > { %v3742_v12 = vadd.f32 %v1060_v9, %v3687_v51  ;;  %1352 = vmax.xlane.f32.xlu0 %v1351_v5  ;;  %v1062_v13 = vpop.f32.mrb[6].mxu0  ;;  %v3745_v14 = vadd.f32 %v1140_v11, %v3687_v51  ;;  %v1142_v15 = vpop.f32.mrb[6].mxu1 }
 0x29e   : > { %1211 = vst [vmem:[%s3350_s16 + $0x20] sm:$0xff] %v3736_v8  ;;  %v3750_v16 = vadd.f32 %v1062_v13, %v3685_v50  ;;  %v1064_v17 = vpop.f32.mrb[7].mxu0  ;;  %1243 = vst [vmem:[%s3350_s16 + $0x120] sm:$0xff] %v3739_v10  ;;  %v3755_v18 = vadd.f32 %v1142_v15, %v3685_v50  ;;  %v1144_v19 = vpop.f32.mrb[7].mxu1 }
 0x29f   : > { %1212 = vst [vmem:[%s3350_s16 + $0x28] sm:$0xff] %v3742_v12  ;;  %v3760_v20 = vadd.f32 %v1064_v17, %v3687_v51  ;;  %1244 = vst [vmem:[%s3350_s16 + $0x128] sm:$0xff] %v3745_v14  ;;  %v1309_v21 = vmax.f32 %v3736_v8, %v3742_v12  ;;  %v3769_v23 = vadd.f32 %v1144_v19, %v3687_v51 }
 0x2a0   : > { %1213 = vst [vmem:[%s3350_s16 + $0x30] sm:$0xff] %v3750_v16  ;;  %1245 = vst [vmem:[%s3350_s16 + $0x130] sm:$0xff] %v3755_v18  ;;  %v1357_v25 = vmax.f32 %v3739_v10, %v3745_v14 }
 0x2a1   : > { %1214 = vst [vmem:[%s3350_s16 + $0x38] sm:$0xff] %v3760_v20  ;;  %1310 = vmax.xlane.f32.xlu1 %v1309_v21  ;;  %1307 = vmax.xlane.f32.xlu0 %v1306_v22  ;;  %1246 = vst [vmem:[%s3350_s16 + $0x138] sm:$0xff] %v3769_v23  ;;  %v1312_v24 = vmax.f32 %v3750_v16, %v3760_v20  ;;  %v1360_v35 = vmax.f32 %v3755_v18, %v3769_v23 }
 0x2a3   : > { %v1068_v27 = vpop.f32.mrb[8].mxu0  ;;  %v1148_v28 = vpop.f32.mrb[8].mxu1 }
 0x2a4   : > { %v3784_v29 = vadd.f32 %v1068_v27, %v3685_v50  ;;  %v1070_v30 = vpop.f32.mrb[9].mxu0  ;;  %v3787_v31 = vadd.f32 %v1148_v28, %v3685_v50  ;;  %v1150_v32 = vpop.f32.mrb[9].mxu1 }
 0x2a5   : > { %1313 = vmax.xlane.f32.xlu1 %v1312_v24  ;;  %v3790_v33 = vadd.f32 %v1070_v30, %v3687_v51  ;;  %v1072_v34 = vpop.f32.mrb[10].mxu0  ;;  %1358 = vmax.xlane.f32.xlu0 %v1357_v25  ;;  %v3795_v36 = vadd.f32 %v1150_v32, %v3687_v51  ;;  %v1152_v37 = vpop.f32.mrb[10].mxu1 }
 0x2a6   : > { %1215 = vst [vmem:[%s3350_s16 + $0x40] sm:$0xff] %v3784_v29  ;;  %v3800_v38 = vadd.f32 %v1072_v34, %v3685_v50  ;;  %v1074_v39 = vpop.f32.mrb[11].mxu0  ;;  %1247 = vst [vmem:[%s3350_s16 + $0x140] sm:$0xff] %v3787_v31  ;;  %v3805_v40 = vadd.f32 %v1152_v37, %v3685_v50  ;;  %v1154_v41 = vpop.f32.mrb[11].mxu1 }
 0x2a7   : > { %1216 = vst [vmem:[%s3350_s16 + $0x48] sm:$0xff] %v3790_v33  ;;  %v3810_v42 = vadd.f32 %v1074_v39, %v3687_v51  ;;  %1248 = vst [vmem:[%s3350_s16 + $0x148] sm:$0xff] %v3795_v36  ;;  %v3815_v43 = vadd.f32 %v1154_v41, %v3687_v51  ;;  %v1315_v44 = vmax.f32 %v3784_v29, %v3790_v33 }
 0x2a8   : > { %1217 = vst [vmem:[%s3350_s16 + $0x50] sm:$0xff] %v3800_v38  ;;  %1249 = vst [vmem:[%s3350_s16 + $0x150] sm:$0xff] %v3805_v40  ;;  %v1363_v46 = vmax.f32 %v3787_v31, %v3795_v36 }
 0x2a9   : > { %1218 = vst [vmem:[%s3350_s16 + $0x58] sm:$0xff] %v3810_v42  ;;  %1361 = vmax.xlane.f32.xlu1 %v1360_v35  ;;  %1250 = vst [vmem:[%s3350_s16 + $0x158] sm:$0xff] %v3815_v43  ;;  %v1318_v45 = vmax.f32 %v3800_v38, %v3810_v42  ;;  %1316 = vmax.xlane.f32.xlu0 %v1315_v44  ;;  %v1366_v61 = vmax.f32 %v3805_v40, %v3815_v43 }
 0x2ab   : > { %v1078_v47 = vpop.f32.mrb[12].mxu0  ;;  %v1158_v48 = vpop.f32.mrb[12].mxu1 }
 0x2ac   : > { %v3832_v49 = vadd.f32 %v1078_v47, %v3685_v50  ;;  %v1080_v52 = vpop.f32.mrb[13].mxu0  ;;  %v3835_v53 = vadd.f32 %v1158_v48, %v3685_v50  ;;  %v1160_v55 = vpop.f32.mrb[13].mxu1 }
 0x2ad   : > { %1319 = vmax.xlane.f32.xlu1 %v1318_v45  ;;  %v3838_v57 = vadd.f32 %v1080_v52, %v3687_v51  ;;  %v1082_v59 = vpop.f32.mrb[14].mxu0  ;;  %v3843_v63 = vadd.f32 %v1160_v55, %v3687_v51  ;;  %v1162_v1 = vpop.f32.mrb[14].mxu1  ;;  %1364 = vmax.xlane.f32.xlu0 %v1363_v46 }
 0x2ae   : > { %1219 = vst [vmem:[%s3350_s16 + $0x60] sm:$0xff] %v3832_v49  ;;  %v3848_v3 = vadd.f32 %v1082_v59, %v3685_v50  ;;  %v1084_v4 = vpop.f32.mrb[15].mxu0  ;;  %1251 = vst [vmem:[%s3350_s16 + $0x160] sm:$0xff] %v3835_v53  ;;  %v3853_v5 = vadd.f32 %v1162_v1, %v3685_v50  ;;  %v1164_v6 = vpop.f32.mrb[15].mxu1 }
 0x2af   : > { %1220 = vst [vmem:[%s3350_s16 + $0x68] sm:$0xff] %v3838_v57  ;;  %v3858_v7 = vadd.f32 %v1084_v4, %v3687_v51  ;;  %1252 = vst [vmem:[%s3350_s16 + $0x168] sm:$0xff] %v3843_v63  ;;  %v3863_v9 = vadd.f32 %v1164_v6, %v3687_v51  ;;  %v1321_v11 = vmax.f32 %v3832_v49, %v3838_v57 }
 0x2b0   : > { %1221 = vst [vmem:[%s3350_s16 + $0x70] sm:$0xff] %v3848_v3  ;;  %1253 = vst [vmem:[%s3350_s16 + $0x170] sm:$0xff] %v3853_v5  ;;  %v1369_v15 = vmax.f32 %v3835_v53, %v3843_v63 }
 0x2b1   : > { %1222 = vst [vmem:[%s3350_s16 + $0x78] sm:$0xff] %v3858_v7  ;;  %1367 = vmax.xlane.f32.xlu1 %v1366_v61  ;;  %1254 = vst [vmem:[%s3350_s16 + $0x178] sm:$0xff] %v3863_v9  ;;  %v1324_v13 = vmax.f32 %v3848_v3, %v3858_v7  ;;  %1322 = vmax.xlane.f32.xlu0 %v1321_v11  ;;  %v1372_v30 = vmax.f32 %v3853_v5, %v3863_v9 }
 0x2b3   : > { %v1088_v17 = vpop.f32.mrb[16].mxu0  ;;  %v1168_v19 = vpop.f32.mrb[16].mxu1 }
 0x2b4   : > { %v3880_v21 = vadd.f32 %v1088_v17, %v3685_v50  ;;  %v1090_v22 = vpop.f32.mrb[17].mxu0  ;;  %v3883_v24 = vadd.f32 %v1168_v19, %v3685_v50  ;;  %v1170_v25 = vpop.f32.mrb[17].mxu1 }
 0x2b5   : > { %1325 = vmax.xlane.f32.xlu1 %v1324_v13  ;;  %v3886_v27 = vadd.f32 %v1090_v22, %v3687_v51  ;;  %v1092_v28 = vpop.f32.mrb[18].mxu0  ;;  %v3891_v32 = vadd.f32 %v1170_v25, %v3687_v51  ;;  %v1172_v34 = vpop.f32.mrb[18].mxu1  ;;  %1370 = vmax.xlane.f32.xlu0 %v1369_v15 }
 0x2b6   : > { %1223 = vst [vmem:[%s3350_s16 + $0x80] sm:$0xff] %v3880_v21  ;;  %v3896_v35 = vadd.f32 %v1092_v28, %v3685_v50  ;;  %v1094_v37 = vpop.f32.mrb[19].mxu0  ;;  %1255 = vst [vmem:[%s3350_s16 + $0x180] sm:$0xff] %v3883_v24  ;;  %v3901_v39 = vadd.f32 %v1172_v34, %v3685_v50  ;;  %v1174_v41 = vpop.f32.mrb[19].mxu1 }
 0x2b7   : > { %1224 = vst [vmem:[%s3350_s16 + $0x88] sm:$0xff] %v3886_v27  ;;  %v3906_v44 = vadd.f32 %v1094_v37, %v3687_v51  ;;  %1256 = vst [vmem:[%s3350_s16 + $0x188] sm:$0xff] %v3891_v32  ;;  %v3911_v45 = vadd.f32 %v1174_v41, %v3687_v51  ;;  %v1327_v46 = vmax.f32 %v3880_v21, %v3886_v27 }
 0x2b8   : > { %1225 = vst [vmem:[%s3350_s16 + $0x90] sm:$0xff] %v3896_v35  ;;  %1257 = vst [vmem:[%s3350_s16 + $0x190] sm:$0xff] %v3901_v39  ;;  %v1375_v48 = vmax.f32 %v3883_v24, %v3891_v32 }
 0x2b9   : > { %1226 = vst [vmem:[%s3350_s16 + $0x98] sm:$0xff] %v3906_v44  ;;  %1373 = vmax.xlane.f32.xlu1 %v1372_v30  ;;  %1258 = vst [vmem:[%s3350_s16 + $0x198] sm:$0xff] %v3911_v45  ;;  %v1330_v47 = vmax.f32 %v3896_v35, %v3906_v44  ;;  %1328 = vmax.xlane.f32.xlu0 %v1327_v46  ;;  %v1378_v13 = vmax.f32 %v3901_v39, %v3911_v45 }
 0x2bb   : > { %v1098_v52 = vpop.f32.mrb[20].mxu0  ;;  %v1178_v55 = vpop.f32.mrb[20].mxu1 }
 0x2bc   : > { %v3928_v59 = vadd.f32 %v1098_v52, %v3685_v50  ;;  %v1100_v61 = vpop.f32.mrb[21].mxu0  ;;  %v3931_v1 = vadd.f32 %v1178_v55, %v3685_v50  ;;  %v1180_v4 = vpop.f32.mrb[21].mxu1 }
 0x2bd   : > { %1331 = vmax.xlane.f32.xlu1 %v1330_v47  ;;  %v3934_v6 = vadd.f32 %v1100_v61, %v3687_v51  ;;  %v1102_v11 = vpop.f32.mrb[22].mxu0  ;;  %v3939_v15 = vadd.f32 %v1180_v4, %v3687_v51  ;;  %v1182_v17 = vpop.f32.mrb[22].mxu1  ;;  %1376 = vmax.xlane.f32.xlu0 %v1375_v48 }
 0x2be   : > { %5133 = vst [vmem:[#allocation16_spill] sm:$0xff] %v3931_v1  ;;  %1227 = vst [vmem:[%s3350_s16 + $0xa0] sm:$0xff] %v3928_v59  ;;  %v3944_v19 = vadd.f32 %v1102_v11, %v3685_v50  ;;  %v1104_v22 = vpop.f32.mrb[23].mxu0  ;;  %v3949_v25 = vadd.f32 %v1182_v17, %v3685_v50  ;;  %v1184_v28 = vpop.f32.mrb[23].mxu1 }
 0x2bf   : > { %5134 = vst [vmem:[#allocation17_spill] sm:$0xff] %v3939_v15  ;;  %1259 = vst [vmem:[%s3350_s16 + $0x1a0] sm:$0xff] %v3931_v1  ;;  %v3954_v30 = vadd.f32 %v1104_v22, %v3687_v51  ;;  %v3959_v34 = vadd.f32 %v1184_v28, %v3687_v51  ;;  %v1333_v37 = vmax.f32 %v3928_v59, %v3934_v6 }
 0x2c0   : > { %1228 = vst [vmem:[%s3350_s16 + $0xa8] sm:$0xff] %v3934_v6  ;;  %1260 = vst [vmem:[%s3350_s16 + $0x1a8] sm:$0xff] %v3939_v15  ;;  %v1381_v46 = vmax.f32 %v3931_v1, %v3939_v15 }
 0x2c1   : > { %1229 = vst [vmem:[%s3350_s16 + $0xb0] sm:$0xff] %v3944_v19  ;;  %1261 = vst [vmem:[%s3350_s16 + $0x1b0] sm:$0xff] %v3949_v25  ;;  %1379 = vmax.xlane.f32.xlu1 %v1378_v13  ;;  %v1336_v41 = vmax.f32 %v3944_v19, %v3954_v30  ;;  %1334 = vmax.xlane.f32.xlu0 %v1333_v37  ;;  %v1384_v17 = vmax.f32 %v3949_v25, %v3959_v34 }
 0x2c2   : > { %1230 = vst [vmem:[%s3350_s16 + $0xb8] sm:$0xff] %v3954_v30  ;;  %1262 = vst [vmem:[%s3350_s16 + $0x1b8] sm:$0xff] %v3959_v34 }
 0x2c3   : > { %v1108_v47 = vpop.f32.mrb[24].mxu0  ;;  %v1188_v48 = vpop.f32.mrb[24].mxu1 }
 0x2c4   : > { %v3976_v52 = vadd.f32 %v1108_v47, %v3685_v50  ;;  %v1110_v55 = vpop.f32.mrb[25].mxu0  ;;  %v3979_v61 = vadd.f32 %v1188_v48, %v3685_v50  ;;  %v1190_v4 = vpop.f32.mrb[25].mxu1 }
 0x2c5   : > { %1337 = vmax.xlane.f32.xlu1 %v1336_v41  ;;  %v3982_v11 = vadd.f32 %v1110_v55, %v3687_v51  ;;  %v1112_v13 = vpop.f32.mrb[26].mxu0  ;;  %v3987_v22 = vadd.f32 %v1190_v4, %v3687_v51  ;;  %v1192_v28 = vpop.f32.mrb[26].mxu1  ;;  %1382 = vmax.xlane.f32.xlu0 %v1381_v46 }
 0x2c6   : > { %5135 = vst [vmem:[#allocation18_spill] sm:$0xff] %v3976_v52  ;;  %5136 = vst [vmem:[#allocation19_spill] sm:$0xff] %v3979_v61  ;;  %v3992_v37 = vadd.f32 %v1112_v13, %v3685_v50  ;;  %v1114_v41 = vpop.f32.mrb[27].mxu0  ;;  %v3997_v47 = vadd.f32 %v1192_v28, %v3685_v50  ;;  %v1194_v48 = vpop.f32.mrb[27].mxu1 }
 0x2c7   : > { %5137 = vst [vmem:[#allocation20_spill] sm:$0xff] %v3982_v11  ;;  %5138 = vst [vmem:[#allocation21_spill] sm:$0xff] %v3987_v22  ;;  %v4002_v55 = vadd.f32 %v1114_v41, %v3687_v51  ;;  %v4007_v46 = vadd.f32 %v1194_v48, %v3687_v51  ;;  %v1339_v4 = vmax.f32 %v3976_v52, %v3982_v11 }
 0x2c8   : > { %1231 = vst [vmem:[%s3350_s16 + $0xc0] sm:$0xff] %v3976_v52  ;;  %1263 = vst [vmem:[%s3350_s16 + $0x1c0] sm:$0xff] %v3979_v61  ;;  %v1387_v28 = vmax.f32 %v3979_v61, %v3987_v22 }
 0x2c9   : > { %1232 = vst [vmem:[%s3350_s16 + $0xc8] sm:$0xff] %v3982_v11  ;;  %5139 = vst [vmem:[#allocation22_spill] sm:$0xff] %v4002_v55  ;;  %1385 = vmax.xlane.f32.xlu1 %v1384_v17  ;;  %v1342_v13 = vmax.f32 %v3992_v37, %v4002_v55  ;;  %1340 = vmax.xlane.f32.xlu0 %v1339_v4 }
 0x2ca   : > { %1264 = vst [vmem:[%s3350_s16 + $0x1c8] sm:$0xff] %v3987_v22  ;;  %1233 = vst [vmem:[%s3350_s16 + $0xd0] sm:$0xff] %v3992_v37  ;;  %v1390_v22 = vmax.f32 %v3997_v47, %v4007_v46 }
 0x2cb   : > { %1265 = vst [vmem:[%s3350_s16 + $0x1d0] sm:$0xff] %v3997_v47  ;;  %1234 = vst [vmem:[%s3350_s16 + $0xd8] sm:$0xff] %v4002_v55  ;;  %v1118_v41 = vpop.f32.mrb[28].mxu0  ;;  %v1198_v48 = vpop.f32.mrb[28].mxu1 }
 0x2cc   : > { %1266 = vst [vmem:[%s3350_s16 + $0x1d8] sm:$0xff] %v4007_v46  ;;  %v4024_v11 = vadd.f32 %v1118_v41, %v3685_v50  ;;  %v1120_v52 = vpop.f32.mrb[29].mxu0  ;;  %v1199_v17 = vadd.f32 %v1198_v48, %v3685_v50  ;;  %v1200_v15 = vpop.f32.mrb[29].mxu1 }
 0x2cd   : > { %1343 = vmax.xlane.f32.xlu1 %v1342_v13  ;;  %v4028_v55 = vadd.f32 %v1120_v52, %v3687_v51  ;;  %v1122_v4 = vpop.f32.mrb[30].mxu0  ;;  %v4033_v61 = vadd.f32 %v1200_v15, %v3687_v51  ;;  %v1202_v41 = vpop.f32.mrb[30].mxu1  ;;  %1388 = vmax.xlane.f32.xlu0 %v1387_v28 }
 0x2ce   : > { %5140 = vst [vmem:[#allocation23_spill] sm:$0xff] %v4024_v11  ;;  %1235 = vst [vmem:[%s3350_s16 + $0xe0] sm:$0xff] %v4024_v11  ;;  %v4038_v13 = vadd.f32 %v1122_v4, %v3685_v50  ;;  %v1124_v52 = vpop.f32.mrb[31].mxu0  ;;  %v4042_v48 = vadd.f32 %v1202_v41, %v3685_v50  ;;  %v1204_v1 = vpop.f32.mrb[31].mxu1 }
 0x2cf   : > { %5141 = vst [vmem:[#allocation24_spill] sm:$0xff] %v4028_v55  ;;  %5142 = vst [vmem:[#allocation25_spill] sm:$0xff] %v4033_v61  ;;  %v4047_v15 = vadd.f32 %v1124_v52, %v3687_v51  ;;  %v4052_v28 = vadd.f32 %v1204_v1, %v3687_v51  ;;  %v1345_v4 = vmax.f32 %v4024_v11, %v4028_v55  ;;  %v4072_v1 = vld [vmem:[%s5031_s6] sm:$0xff]  ;;  %v4077_v52 = vld [vmem:[%s5031_s6 + $0x88] sm:$0xff] }
 0x2d0   : > { %5143 = vst [vmem:[#allocation26_spill] sm:$0xff] %v4038_v13  ;;  %1267 = vst [vmem:[%s3350_s16 + $0x1e0] sm:$0xff] %v1199_v17  ;;  %v1393_v41 = vmax.f32 %v1199_v17, %v4033_v61 }
 0x2d1   : > { %5144 = vst [vmem:[#allocation27_spill] sm:$0xff] %v4042_v48  ;;  %1236 = vst [vmem:[%s3350_s16 + $0xe8] sm:$0xff] %v4028_v55  ;;  %1391 = vmax.xlane.f32.xlu1 %v1390_v22  ;;  %v1348_v50 = vmax.f32 %v4038_v13, %v4047_v15  ;;  %1346 = vmax.xlane.f32.xlu0 %v1345_v4  ;;  %v1396_v51 = vmax.f32 %v4042_v48, %v4052_v28 }
 0x2d2   : > { %5145 = vst [vmem:[#allocation28_spill] sm:$0xff] %v4047_v15  ;;  %1268 = vst [vmem:[%s3350_s16 + $0x1e8] sm:$0xff] %v4033_v61  ;;  %v4136_v61 = vld [vmem:[%s5031_s6 + $0x18] sm:$0xff] }
 0x2d3   : > { %5146 = vst [vmem:[#allocation29_spill] sm:$0xff] %v4052_v28  ;;  %1237 = vst [vmem:[%s3350_s16 + $0xf0] sm:$0xff] %v4038_v13 }
 0x2d4   : > { %1269 = vst [vmem:[%s3350_s16 + $0x1f0] sm:$0xff] %v4042_v48  ;;  %1238 = vst [vmem:[%s3350_s16 + $0xf8] sm:$0xff] %v4047_v15 }
 0x2d5   : > { %1270 = vst [vmem:[%s3350_s16 + $0x1f8] sm:$0xff] %v4052_v28  ;;  %1349 = vmax.xlane.f32.xlu1 %v1348_v50  ;;  %1394 = vmax.xlane.f32.xlu0 %v1393_v41  ;;  %5147 = vst [vmem:[#allocation30_spill] sm:$0xff] %v4072_v1  ;;  %v4085_v50 = vld [vmem:[%s5031_s6 + $0x80] sm:$0xff] }
 0x2d6   : > { %5148 = vst [vmem:[#allocation31_spill] sm:$0xff] %v4077_v52  ;;  %5150 = vst [vmem:[#allocation33_spill] sm:$0xff] %v4085_v50 }
 0x2d7   : > { %5157 = vst [vmem:[#allocation40_spill] sm:$0xff] %v4136_v61 }
 0x2d9   : > { %1397 = vmax.xlane.f32.xlu1 %v1396_v51 }
 0x326   : > { %v1305_v22 = vpop.xlane.xlu0 %1304 }
 0x327   : > { %v4080_v17 = vmax.f32 %v4072_v1, %v1305_v22 }
 0x328   : > { %v1356_v4 = vpop.xlane.xlu1 %1355 }
 0x329   : > { %5149 = vst [vmem:[#allocation32_spill] sm:$0xff] %v4080_v17  ;;  %2104 = vst.msk [vmem:[%s5031_s6] sm:$0xff] %vm2071_vm1, %v4080_v17  ;;  %v4095_v51 = vmax.f32 %v4077_v52, %v1356_v4  ;;  %1593 = vperm.xlu0 %2683, %v4080_v17   ;;  %v4111_v4 = vld [vmem:[%s5031_s6 + $0x10] sm:$0xff]  ;;  %v4116_v17 = vld [vmem:[%s5031_s6 + $0x8] sm:$0xff] }
 0x32a   : > { %v1353_v22 = vpop.xlane.xlu0 %1352  ;;  %5153 = vst [vmem:[#allocation36_spill] sm:$0xff] %v4111_v4  ;;  %5154 = vst [vmem:[#allocation37_spill] sm:$0xff] %v4116_v17 }
 0x32b   : > { %5151 = vst [vmem:[#allocation34_spill] sm:$0xff] %v4095_v51  ;;  %2121 = vst.msk [vmem:[%s5031_s6 + $0x88] sm:$0xff] %vm2071_vm1, %v4095_v51  ;;  %v4106_v41 = vmax.f32 %v4085_v50, %v1353_v22  ;;  %v4141_v50 = vld [vmem:[%s5031_s6 + $0x90] sm:$0xff] }
 0x32c   : > { %5158 = vst [vmem:[#allocation41_spill] sm:$0xff] %v4141_v50 }
 0x32d   : > { %5152 = vst [vmem:[#allocation35_spill] sm:$0xff] %v4106_v41  ;;  %2120 = vst.msk [vmem:[%s5031_s6 + $0x80] sm:$0xff] %vm2071_vm1, %v4106_v41  ;;  %1678 = vperm.xlu0 %2683, %v4095_v51   ;;  %1673 = vperm.xlu1 %2684, %v4106_v41  }
 0x32e   : > { %v1311_v22 = vpop.xlane.xlu1 %1310  ;;  %v1308_v52 = vpop.xlane.xlu0 %1307 }
 0x32f   : > { %v4128_v1 = vmax.f32 %v4111_v4, %v1311_v22  ;;  %v4131_v28 = vmax.f32 %v4116_v17, %v1308_v52  ;;  %v4167_v52 = vld [vmem:[%s5031_s6 + $0x98] sm:$0xff]  ;;  %v4172_v17 = vld [vmem:[%s5031_s6 + $0x20] sm:$0xff] }
 0x330   : > { %5161 = vst [vmem:[#allocation44_spill] sm:$0xff] %v4167_v52  ;;  %5162 = vst [vmem:[#allocation45_spill] sm:$0xff] %v4172_v17 }
 0x331   : > { %5155 = vst [vmem:[#allocation38_spill] sm:$0xff] %v4128_v1  ;;  %5156 = vst [vmem:[#allocation39_spill] sm:$0xff] %v4131_v28  ;;  %1598 = vperm.xlu1 %2684, %v4131_v28  }
 0x332   : > { %2106 = vst.msk [vmem:[%s5031_s6 + $0x10] sm:$0xff] %vm2071_vm1, %v4128_v1  ;;  %2105 = vst.msk [vmem:[%s5031_s6 + $0x8] sm:$0xff] %vm2071_vm1, %v4131_v28  ;;  %v1314_v22 = vpop.xlane.xlu1 %1313  ;;  %v1359_v41 = vpop.xlane.xlu0 %1358 }
 0x333   : > { %v4159_v51 = vmax.f32 %v4136_v61, %v1314_v22  ;;  %v4162_v4 = vmax.f32 %v4141_v50, %v1359_v41  ;;  %v4203_v41 = vld [vmem:[%s5031_s6 + $0xa0] sm:$0xff] }
 0x334   : > { %5166 = vst [vmem:[#allocation49_spill] sm:$0xff] %v4203_v41 }
 0x335   : > { %5159 = vst [vmem:[#allocation42_spill] sm:$0xff] %v4159_v51  ;;  %5160 = vst [vmem:[#allocation43_spill] sm:$0xff] %v4162_v4  ;;  %1603 = vperm.xlu1 %2684, %v4128_v1   ;;  %v4198_v1 = vld [vmem:[%s5031_s6 + $0x28] sm:$0xff] }
 0x336   : > { %2107 = vst.msk [vmem:[%s5031_s6 + $0x18] sm:$0xff] %vm2071_vm1, %v4159_v51  ;;  %2122 = vst.msk [vmem:[%s5031_s6 + $0x90] sm:$0xff] %vm2071_vm1, %v4162_v4  ;;  %v1362_v22 = vpop.xlane.xlu1 %1361  ;;  %v1317_v48 = vpop.xlane.xlu0 %1316 }
 0x337   : > { %v4190_v28 = vmax.f32 %v4167_v52, %v1362_v22  ;;  %v4193_v61 = vmax.f32 %v4172_v17, %v1317_v48  ;;  %5165 = vst [vmem:[#allocation48_spill] sm:$0xff] %v4198_v1  ;;  %v4235_v48 = vld [vmem:[%s5031_s6 + $0x30] sm:$0xff] }
 0x338   : > { %5170 = vst [vmem:[#allocation53_spill] sm:$0xff] %v4235_v48 }
 0x339   : > { %5163 = vst [vmem:[#allocation46_spill] sm:$0xff] %v4190_v28  ;;  %5164 = vst [vmem:[#allocation47_spill] sm:$0xff] %v4193_v61  ;;  %1688 = vperm.xlu0 %2683, %v4190_v28   ;;  %1683 = vperm.xlu1 %2684, %v4162_v4  }
 0x33a   : > { %2123 = vst.msk [vmem:[%s5031_s6 + $0x98] sm:$0xff] %vm2071_vm1, %v4190_v28  ;;  %2108 = vst.msk [vmem:[%s5031_s6 + $0x20] sm:$0xff] %vm2071_vm1, %v4193_v61  ;;  %v1320_v22 = vpop.xlane.xlu1 %1319  ;;  %v1365_v50 = vpop.xlane.xlu0 %1364  ;;  %v4230_v28 = vld [vmem:[%s5031_s6 + $0xa8] sm:$0xff] }
 0x33b   : > { %v4222_v52 = vmax.f32 %v4198_v1, %v1320_v22  ;;  %v4225_v55 = vmax.f32 %v4203_v41, %v1365_v50  ;;  %5169 = vst [vmem:[#allocation52_spill] sm:$0xff] %v4230_v28  ;;  %v4266_v50 = vld [vmem:[%s5031_s6 + $0xb0] sm:$0xff] }
 0x33c   : > { %5174 = vst [vmem:[#allocation57_spill] sm:$0xff] %v4266_v50 }
 0x33d   : > { %5167 = vst [vmem:[#allocation50_spill] sm:$0xff] %v4222_v52  ;;  %5168 = vst [vmem:[#allocation51_spill] sm:$0xff] %v4225_v55  ;;  %1608 = vperm.xlu1 %2684, %v4159_v51   ;;  %v4261_v51 = vld [vmem:[%s5031_s6 + $0x38] sm:$0xff] }
 0x33e   : > { %2109 = vst.msk [vmem:[%s5031_s6 + $0x28] sm:$0xff] %vm2071_vm1, %v4222_v52  ;;  %2124 = vst.msk [vmem:[%s5031_s6 + $0xa0] sm:$0xff] %vm2071_vm1, %v4225_v55  ;;  %v1368_v22 = vpop.xlane.xlu1 %1367  ;;  %v1323_v4 = vpop.xlane.xlu0 %1322 }
 0x33f   : > { %v4253_v17 = vmax.f32 %v4230_v28, %v1368_v22  ;;  %v4256_v1 = vmax.f32 %v4235_v48, %v1323_v4  ;;  %5173 = vst [vmem:[#allocation56_spill] sm:$0xff] %v4261_v51  ;;  %v4298_v4 = vld [vmem:[%s5031_s6 + $0x40] sm:$0xff] }
 0x340   : > { %5178 = vst [vmem:[#allocation61_spill] sm:$0xff] %v4298_v4 }
 0x341   : > { %5171 = vst [vmem:[#allocation54_spill] sm:$0xff] %v4253_v17  ;;  %5172 = vst [vmem:[#allocation55_spill] sm:$0xff] %v4256_v1  ;;  %1698 = vperm.xlu0 %2683, %v4253_v17   ;;  %1613 = vperm.xlu1 %2684, %v4193_v61  }
 0x342   : > { %2125 = vst.msk [vmem:[%s5031_s6 + $0xa8] sm:$0xff] %vm2071_vm1, %v4253_v17  ;;  %2110 = vst.msk [vmem:[%s5031_s6 + $0x30] sm:$0xff] %vm2071_vm1, %v4256_v1  ;;  %v1326_v22 = vpop.xlane.xlu1 %1325  ;;  %v1371_v41 = vpop.xlane.xlu0 %1370  ;;  %v4293_v17 = vld [vmem:[%s5031_s6 + $0xb8] sm:$0xff] }
 0x343   : > { %v4285_v28 = vmax.f32 %v4261_v51, %v1326_v22  ;;  %v4288_v11 = vmax.f32 %v4266_v50, %v1371_v41  ;;  %5177 = vst [vmem:[#allocation60_spill] sm:$0xff] %v4293_v17  ;;  %v4329_v41 = vld [vmem:[%s5031_s6 + $0xc0] sm:$0xff] }
 0x344   : > { %5182 = vst [vmem:[#allocation65_spill] sm:$0xff] %v4329_v41 }
 0x345   : > { %5175 = vst [vmem:[#allocation58_spill] sm:$0xff] %v4285_v28  ;;  %5176 = vst [vmem:[#allocation59_spill] sm:$0xff] %v4288_v11  ;;  %1693 = vperm.xlu1 %2684, %v4225_v55   ;;  %v4324_v55 = vld [vmem:[%s5031_s6 + $0x48] sm:$0xff] }
 0x346   : > { %2111 = vst.msk [vmem:[%s5031_s6 + $0x38] sm:$0xff] %vm2071_vm1, %v4285_v28  ;;  %2126 = vst.msk [vmem:[%s5031_s6 + $0xb0] sm:$0xff] %vm2071_vm1, %v4288_v11  ;;  %v1374_v22 = vpop.xlane.xlu1 %1373  ;;  %v1329_v61 = vpop.xlane.xlu0 %1328 }
 0x347   : > { %v4316_v48 = vmax.f32 %v4293_v17, %v1374_v22  ;;  %v4319_v51 = vmax.f32 %v4298_v4, %v1329_v61  ;;  %5181 = vst [vmem:[#allocation64_spill] sm:$0xff] %v4324_v55  ;;  %v4361_v61 = vld [vmem:[%s5031_s6 + $0x50] sm:$0xff] }
 0x348   : > { %5186 = vst [vmem:[#allocation69_spill] sm:$0xff] %v4361_v61 }
 0x349   : > { %5179 = vst [vmem:[#allocation62_spill] sm:$0xff] %v4316_v48  ;;  %5180 = vst [vmem:[#allocation63_spill] sm:$0xff] %v4319_v51  ;;  %1708 = vperm.xlu0 %2683, %v4316_v48   ;;  %1618 = vperm.xlu1 %2684, %v4222_v52  }
 0x34a   : > { %2127 = vst.msk [vmem:[%s5031_s6 + $0xb8] sm:$0xff] %vm2071_vm1, %v4316_v48  ;;  %2112 = vst.msk [vmem:[%s5031_s6 + $0x40] sm:$0xff] %vm2071_vm1, %v4319_v51  ;;  %v1332_v22 = vpop.xlane.xlu1 %1331  ;;  %v1377_v50 = vpop.xlane.xlu0 %1376  ;;  %v4356_v48 = vld [vmem:[%s5031_s6 + $0xc8] sm:$0xff] }
 0x34b   : > { %v4348_v17 = vmax.f32 %v4324_v55, %v1332_v22  ;;  %v4351_v15 = vmax.f32 %v4329_v41, %v1377_v50  ;;  %5185 = vst [vmem:[#allocation68_spill] sm:$0xff] %v4356_v48  ;;  %v4393_v50 = vld [vmem:[%s5031_s6 + $0xd0] sm:$0xff] }
 0x34c   : > { %5190 = vst [vmem:[#allocation73_spill] sm:$0xff] %v4393_v50 }
 0x34d   : > { %5183 = vst [vmem:[#allocation66_spill] sm:$0xff] %v4348_v17  ;;  %5184 = vst [vmem:[#allocation67_spill] sm:$0xff] %v4351_v15  ;;  %1638 = vperm.xlu0 %2683, %v4348_v17   ;;  %1623 = vperm.xlu1 %2684, %v4256_v1  }
 0x34e   : > { %2113 = vst.msk [vmem:[%s5031_s6 + $0x48] sm:$0xff] %vm2071_vm1, %v4348_v17  ;;  %2128 = vst.msk [vmem:[%s5031_s6 + $0xc0] sm:$0xff] %vm2071_vm1, %v4351_v15  ;;  %v1380_v22 = vpop.xlane.xlu1 %1379  ;;  %v1335_v4 = vpop.xlane.xlu0 %1334  ;;  %v4388_v17 = vld [vmem:[%s5031_s6 + $0x58] sm:$0xff] }
 0x34f   : > { %v4380_v55 = vmax.f32 %v4356_v48, %v1380_v22  ;;  %v4383_v52 = vmax.f32 %v4361_v61, %v1335_v4  ;;  %5189 = vst [vmem:[#allocation72_spill] sm:$0xff] %v4388_v17  ;;  %v4425_v4 = vld [vmem:[%s5031_s6 + $0x60] sm:$0xff] }
 0x350   : > { %5194 = vst [vmem:[#allocation77_spill] sm:$0xff] %v4425_v4 }
 0x351   : > { %5187 = vst [vmem:[#allocation70_spill] sm:$0xff] %v4380_v55  ;;  %5188 = vst [vmem:[#allocation71_spill] sm:$0xff] %v4383_v52  ;;  %1718 = vperm.xlu0 %2683, %v4380_v55   ;;  %1703 = vperm.xlu1 %2684, %v4288_v11  }
 0x352   : > { %2129 = vst.msk [vmem:[%s5031_s6 + $0xc8] sm:$0xff] %vm2071_vm1, %v4380_v55  ;;  %2114 = vst.msk [vmem:[%s5031_s6 + $0x50] sm:$0xff] %vm2071_vm1, %v4383_v52  ;;  %v1338_v22 = vpop.xlane.xlu1 %1337  ;;  %v1383_v41 = vpop.xlane.xlu0 %1382  ;;  %v4420_v55 = vld [vmem:[%s5031_s6 + $0xd8] sm:$0xff] }
 0x353   : > { %v4412_v48 = vmax.f32 %v4388_v17, %v1338_v22  ;;  %v4415_v1 = vmax.f32 %v4393_v50, %v1383_v41  ;;  %5193 = vst [vmem:[#allocation76_spill] sm:$0xff] %v4420_v55  ;;  %v4457_v41 = vld [vmem:[%s5031_s6 + $0xe0] sm:$0xff] }
 0x354   : > { %5198 = vst [vmem:[#allocation81_spill] sm:$0xff] %v4457_v41 }
 0x355   : > { %5191 = vst [vmem:[#allocation74_spill] sm:$0xff] %v4412_v48  ;;  %5192 = vst [vmem:[#allocation75_spill] sm:$0xff] %v4415_v1  ;;  %1648 = vperm.xlu0 %2683, %v4412_v48   ;;  %1628 = vperm.xlu1 %2684, %v4285_v28  }
 0x356   : > { %2115 = vst.msk [vmem:[%s5031_s6 + $0x58] sm:$0xff] %vm2071_vm1, %v4412_v48  ;;  %2130 = vst.msk [vmem:[%s5031_s6 + $0xd0] sm:$0xff] %vm2071_vm1, %v4415_v1  ;;  %v1386_v22 = vpop.xlane.xlu1 %1385  ;;  %v1341_v61 = vpop.xlane.xlu0 %1340  ;;  %v4452_v48 = vld [vmem:[%s5031_s6 + $0x68] sm:$0xff] }
 0x357   : > { %v4444_v17 = vmax.f32 %v4420_v55, %v1386_v22  ;;  %v4447_v11 = vmax.f32 %v4425_v4, %v1341_v61  ;;  %5197 = vst [vmem:[#allocation80_spill] sm:$0xff] %v4452_v48  ;;  %v4489_v61 = vld [vmem:[%s5031_s6 + $0x70] sm:$0xff] }
 0x358   : > { %5202 = vst [vmem:[#allocation85_spill] sm:$0xff] %v4489_v61 }
 0x359   : > { %5195 = vst [vmem:[#allocation78_spill] sm:$0xff] %v4444_v17  ;;  %5196 = vst [vmem:[#allocation79_spill] sm:$0xff] %v4447_v11  ;;  %1728 = vperm.xlu0 %2683, %v4444_v17   ;;  %1633 = vperm.xlu1 %2684, %v4319_v51  }
 0x35a   : > { %2131 = vst.msk [vmem:[%s5031_s6 + $0xd8] sm:$0xff] %vm2071_vm1, %v4444_v17  ;;  %2116 = vst.msk [vmem:[%s5031_s6 + $0x60] sm:$0xff] %vm2071_vm1, %v4447_v11  ;;  %v1344_v22 = vpop.xlane.xlu1 %1343  ;;  %v1389_v50 = vpop.xlane.xlu0 %1388  ;;  %v4484_v17 = vld [vmem:[%s5031_s6 + $0xe8] sm:$0xff] }
 0x35b   : > { %v4476_v55 = vmax.f32 %v4452_v48, %v1344_v22  ;;  %v4479_v28 = vmax.f32 %v4457_v41, %v1389_v50  ;;  %5201 = vst [vmem:[#allocation84_spill] sm:$0xff] %v4484_v17  ;;  %v4521_v50 = vld [vmem:[%s5031_s6 + $0xf0] sm:$0xff] }
 0x35c   : > { %5206 = vst [vmem:[#allocation89_spill] sm:$0xff] %v4521_v50 }
 0x35d   : > { %5199 = vst [vmem:[#allocation82_spill] sm:$0xff] %v4476_v55  ;;  %5200 = vst [vmem:[#allocation83_spill] sm:$0xff] %v4479_v28  ;;  %1658 = vperm.xlu0 %2683, %v4476_v55   ;;  %1713 = vperm.xlu1 %2684, %v4351_v15  }
 0x35e   : > { %2117 = vst.msk [vmem:[%s5031_s6 + $0x68] sm:$0xff] %vm2071_vm1, %v4476_v55  ;;  %2132 = vst.msk [vmem:[%s5031_s6 + $0xe0] sm:$0xff] %vm2071_vm1, %v4479_v28  ;;  %v1392_v22 = vpop.xlane.xlu1 %1391  ;;  %v1347_v4 = vpop.xlane.xlu0 %1346  ;;  %v4516_v55 = vld [vmem:[%s5031_s6 + $0x78] sm:$0xff] }
 0x35f   : > { %v4508_v48 = vmax.f32 %v4484_v17, %v1392_v22  ;;  %v4511_v51 = vmax.f32 %v4489_v61, %v1347_v4  ;;  %5205 = vst [vmem:[#allocation88_spill] sm:$0xff] %v4516_v55 }
 0x361   : > { %5203 = vst [vmem:[#allocation86_spill] sm:$0xff] %v4508_v48  ;;  %5204 = vst [vmem:[#allocation87_spill] sm:$0xff] %v4511_v51  ;;  %1738 = vperm.xlu0 %2683, %v4508_v48   ;;  %1643 = vperm.xlu1 %2684, %v4383_v52  }
 0x362   : > { %2133 = vst.msk [vmem:[%s5031_s6 + $0xe8] sm:$0xff] %vm2071_vm1, %v4508_v48  ;;  %2118 = vst.msk [vmem:[%s5031_s6 + $0x70] sm:$0xff] %vm2071_vm1, %v4511_v51  ;;  %v1350_v22 = vpop.xlane.xlu1 %1349  ;;  %v1395_v41 = vpop.xlane.xlu0 %1394  ;;  %v4548_v48 = vld [vmem:[%s5031_s6 + $0xf8] sm:$0xff] }
 0x363   : > { %v4540_v17 = vmax.f32 %v4516_v55, %v1350_v22  ;;  %v4543_v15 = vmax.f32 %v4521_v50, %v1395_v41  ;;  %5209 = vst [vmem:[#allocation92_spill] sm:$0xff] %v4548_v48 }
 0x365   : > { %5207 = vst [vmem:[#allocation90_spill] sm:$0xff] %v4540_v17  ;;  %5208 = vst [vmem:[#allocation91_spill] sm:$0xff] %v4543_v15  ;;  %1668 = vperm.xlu0 %2683, %v4540_v17   ;;  %1723 = vperm.xlu1 %2684, %v4415_v1  }
 0x366   : > { %2119 = vst.msk [vmem:[%s5031_s6 + $0x78] sm:$0xff] %vm2071_vm1, %v4540_v17  ;;  %2134 = vst.msk [vmem:[%s5031_s6 + $0xf0] sm:$0xff] %vm2071_vm1, %v4543_v15  ;;  %v1398_v22 = vpop.xlane.xlu1 %1397 }
 0x367   : > { %v4567_v4 = vmax.f32 %v4548_v48, %v1398_v22 }
 0x369   : > { %5210 = vst [vmem:[#allocation93_spill] sm:$0xff] %v4567_v4  ;;  %2135 = vst.msk [vmem:[%s5031_s6 + $0xf8] sm:$0xff] %vm2071_vm1, %v4567_v4  ;;  %1748 = vperm.xlu0 %2683, %v4567_v4   ;;  %1653 = vperm.xlu1 %2684, %v4447_v11  }
 0x36d   : > { %1733 = vperm.xlu1 %2684, %v4479_v28  }
 0x371   : > { %1663 = vperm.xlu1 %2684, %v4511_v51  }
 0x375   : > { %1743 = vperm.xlu1 %2684, %v4543_v15  }
 0x3a8   : > { %v1594_v22 = vpop.permute.xlu0 %1593 }
 0x3a9   : > { %v1751_v41 = vsub.f32 %v3690_v54, %v1594_v22  ;;  %v1752_v55 = vsub.f32 %v3696_v58, %v1594_v22 }
 0x3ab   : > { %v1815_v48 = vmul.f32 1.442695, %v1751_v41  ;;  %v1817_v50 = vmul.f32 1.442695, %v1752_v55 }
 0x3ac   : > { %v1674_v17 = vpop.permute.xlu1 %1673  ;;  %v1679_v61 = vpop.permute.xlu0 %1678 }
 0x3ad   : > { %2709 = vpow2.f32 %v1815_v48  ;;  %v1783_v4 = vsub.f32 %v3693_v56, %v1674_v17  ;;  %v1784_v11 = vsub.f32 %v3699_v60, %v1674_v17  ;;  %v1785_v28 = vsub.f32 %v3709_v0, %v1679_v61 }
 0x3ae   : > { %2711 = vpow2.f32 %v1817_v50  ;;  %v1786_v51 = vsub.f32 %v3719_v2, %v1679_v61 }
 0x3af   : > { %v1879_v15 = vmul.f32 1.442695, %v1783_v4  ;;  %v1881_v1 = vmul.f32 1.442695, %v1784_v11  ;;  %v1883_v52 = vmul.f32 1.442695, %v1785_v28 }
 0x3b0   : > { %v1885_v54 = vmul.f32 1.442695, %v1786_v51  ;;  %v1599_v13 = vpop.permute.xlu1 %1598 }
 0x3b1   : > { %2713 = vpow2.f32 %v1879_v15  ;;  %v1753_v58 = vsub.f32 %v3706_v62, %v1599_v13  ;;  %v1754_v55 = vsub.f32 %v3716_v26, %v1599_v13 }
 0x3b2   : > { %2715 = vpow2.f32 %v1881_v1 }
 0x3b3   : > { %2717 = vpow2.f32 %v1883_v52  ;;  %v1819_v56 = vmul.f32 1.442695, %v1753_v58  ;;  %v1821_v48 = vmul.f32 1.442695, %v1754_v55 }
 0x3b4   : > { %2719 = vpow2.f32 %v1885_v54  ;;  %v1604_v60 = vpop.permute.xlu1 %1603 }
 0x3b5   : > { %2721 = vpow2.f32 %v1819_v56  ;;  %v1755_v0 = vsub.f32 %v3736_v8, %v1604_v60  ;;  %v1756_v2 = vsub.f32 %v3742_v12, %v1604_v60 }
 0x3b6   : > { %2723 = vpow2.f32 %v1821_v48 }
 0x3b7   : > { %v2710_v11 = vpop.eup %2709  ;;  %v1823_v28 = vmul.f32 1.442695, %v1755_v0  ;;  %v1825_v17 = vmul.f32 1.442695, %v1756_v2 }
 0x3b8   : > { %v2712_v15 = vpop.eup %2711  ;;  %v1684_v51 = vpop.permute.xlu1 %1683 }
 0x3b9   : > { %v1689_v62 = vpop.permute.xlu0 %1688  ;;  %2725 = vpow2.f32 %v1823_v28  ;;  %v1787_v26 = vsub.f32 %v3739_v10, %v1684_v51  ;;  %v1788_v13 = vsub.f32 %v3745_v14, %v1684_v51  ;;  %v1943_v1 = vadd.f32 %v2712_v15, %v2710_v11 }
 0x3ba   : > { %2727 = vpow2.f32 %v1825_v17  ;;  %v1789_v8 = vsub.f32 %v3755_v18, %v1689_v62  ;;  %v1790_v4 = vsub.f32 %v3769_v23, %v1689_v62 }
 0x3bb   : > { %v2714_v52 = vpop.eup %2713  ;;  %v1887_v61 = vmul.f32 1.442695, %v1787_v26  ;;  %v1889_v50 = vmul.f32 1.442695, %v1788_v13  ;;  %1944 = vadd.xlane.f32.xlu1 %v1943_v1 }
 0x3bc   : > { %v2716_v12 = vpop.eup %2715  ;;  %v1609_v41 = vpop.permute.xlu1 %1608  ;;  %v1891_v56 = vmul.f32 1.442695, %v1789_v8  ;;  %v1893_v2 = vmul.f32 1.442695, %v1790_v4 }
 0x3bd   : > { %v2718_v22 = vpop.eup %2717  ;;  %2729 = vpow2.f32 %v1887_v61  ;;  %v1757_v54 = vsub.f32 %v3750_v16, %v1609_v41  ;;  %v1758_v10 = vsub.f32 %v3760_v20, %v1609_v41  ;;  %v1991_v58 = vadd.f32 %v2716_v12, %v2714_v52 }
 0x3be   : > { %v2720_v14 = vpop.eup %2719  ;;  %2731 = vpow2.f32 %v1889_v50 }
 0x3bf   : > { %v2722_v55 = vpop.eup %2721  ;;  %v1827_v48 = vmul.f32 1.442695, %v1757_v54  ;;  %v1829_v60 = vmul.f32 1.442695, %v1758_v10  ;;  %1992 = vadd.xlane.f32.xlu0 %v1991_v58  ;;  %v1994_v18 = vadd.f32 %v2720_v14, %v2718_v22 }
 0x3c0   : > { %v2724_v0 = vpop.eup %2723  ;;  %v1614_v23 = vpop.permute.xlu1 %1613 }
 0x3c1   : > { %2733 = vpow2.f32 %v1827_v48  ;;  %1995 = vadd.xlane.f32.xlu1 %v1994_v18  ;;  %v1759_v11 = vsub.f32 %v3784_v29, %v1614_v23  ;;  %v1760_v16 = vsub.f32 %v3790_v33, %v1614_v23  ;;  %v1946_v20 = vadd.f32 %v2724_v0, %v2722_v55  ;;  %v1699_v62 = vpop.permute.xlu0 %1698 }
 0x3c2   : > { %2735 = vpow2.f32 %v1829_v60  ;;  %v1793_v33 = vsub.f32 %v3805_v40, %v1699_v62  ;;  %v1794_v12 = vsub.f32 %v3815_v43, %v1699_v62 }
 0x3c3   : > { %v2726_v28 = vpop.eup %2725  ;;  %2737 = vpow2.f32 %v1891_v56  ;;  %v1831_v17 = vmul.f32 1.442695, %v1759_v11  ;;  %v1833_v15 = vmul.f32 1.442695, %v1760_v16  ;;  %1947 = vadd.xlane.f32.xlu0 %v1946_v20 }
 0x3c4   : > { %v2728_v51 = vpop.eup %2727  ;;  %2739 = vpow2.f32 %v1893_v2  ;;  %v1694_v26 = vpop.permute.xlu1 %1693  ;;  %v1899_v10 = vmul.f32 1.442695, %v1793_v33  ;;  %v1901_v55 = vmul.f32 1.442695, %v1794_v12 }
 0x3c5   : > { %2741 = vpow2.f32 %v1831_v17  ;;  %v1791_v13 = vsub.f32 %v3787_v31, %v1694_v26  ;;  %v1792_v1 = vsub.f32 %v3795_v36, %v1694_v26  ;;  %v1949_v52 = vadd.f32 %v2728_v51, %v2726_v28 }
 0x3c6   : > { %2743 = vpow2.f32 %v1833_v15 }
 0x3c7   : > { %v2730_v29 = vpop.eup %2729  ;;  %v1895_v61 = vmul.f32 1.442695, %v1791_v13  ;;  %v1897_v50 = vmul.f32 1.442695, %v1792_v1  ;;  %1950 = vadd.xlane.f32.xlu0 %v1949_v52 }
 0x3c8   : > { %v2732_v8 = vpop.eup %2731  ;;  %v1619_v4 = vpop.permute.xlu1 %1618 }
 0x3c9   : > { %v1709_v41 = vpop.permute.xlu0 %1708  ;;  %2745 = vpow2.f32 %v1895_v61  ;;  %v1761_v22 = vsub.f32 %v3800_v38, %v1619_v4  ;;  %v1762_v31 = vsub.f32 %v3810_v42, %v1619_v4  ;;  %v1997_v36 = vadd.f32 %v2732_v8, %v2730_v29 }
 0x3ca   : > { %2747 = vpow2.f32 %v1897_v50  ;;  %v1797_v56 = vsub.f32 %v3853_v5, %v1709_v41  ;;  %v1798_v5 = vsub.f32 %v3863_v9, %v1709_v41 }
 0x3cb   : > { %v2734_v54 = vpop.eup %2733  ;;  %v1835_v58 = vmul.f32 1.442695, %v1761_v22  ;;  %v1837_v14 = vmul.f32 1.442695, %v1762_v31  ;;  %1998 = vadd.xlane.f32.xlu0 %v1997_v36 }
 0x3cc   : > { %v2736_v40 = vpop.eup %2735  ;;  %v1624_v43 = vpop.permute.xlu1 %1623  ;;  %v1907_v20 = vmul.f32 1.442695, %v1797_v56  ;;  %v1909_v9 = vmul.f32 1.442695, %v1798_v5 }
 0x3cd   : > { %v1639_v48 = vpop.permute.xlu0 %1638  ;;  %v2738_v60 = vpop.eup %2737  ;;  %2749 = vpow2.f32 %v1835_v58  ;;  %v1763_v18 = vsub.f32 %v3832_v49, %v1624_v43  ;;  %v1764_v38 = vsub.f32 %v3838_v57, %v1624_v43  ;;  %v1952_v0 = vadd.f32 %v2736_v40, %v2734_v54 }
 0x3ce   : > { %v2740_v42 = vpop.eup %2739  ;;  %2751 = vpow2.f32 %v1837_v14  ;;  %v1769_v26 = vsub.f32 %v3896_v35, %v1639_v48  ;;  %v1770_v29 = vsub.f32 %v3906_v44, %v1639_v48 }
 0x3cf   : > { %v2742_v2 = vpop.eup %2741  ;;  %2753 = vpow2.f32 %v1899_v10  ;;  %v1839_v23 = vmul.f32 1.442695, %v1763_v18  ;;  %v1841_v11 = vmul.f32 1.442695, %v1764_v38  ;;  %1953 = vadd.xlane.f32.xlu1 %v1952_v0  ;;  %v2000_v51 = vadd.f32 %v2740_v42, %v2738_v60 }
 0x3d0   : > { %v2744_v16 = vpop.eup %2743  ;;  %2755 = vpow2.f32 %v1901_v55  ;;  %v1704_v28 = vpop.permute.xlu1 %1703  ;;  %v1851_v8 = vmul.f32 1.442695, %v1769_v26  ;;  %v1853_v44 = vmul.f32 1.442695, %v1770_v29  ;;  %v5212_v29 = vld [vmem:[#allocation17_spill] sm:$0xff] }
 0x3d1   : > { %v1719_v17 = vpop.permute.xlu0 %1718  ;;  %2757 = vpow2.f32 %v1839_v23  ;;  %v1795_v49 = vsub.f32 %v3835_v53, %v1704_v28  ;;  %v1796_v57 = vsub.f32 %v3843_v63, %v1704_v28  ;;  %v1955_v15 = vadd.f32 %v2744_v16, %v2742_v2 }
 0x3d2   : > { %2759 = vpow2.f32 %v1841_v11  ;;  %v1801_v12 = vsub.f32 %v3901_v39, %v1719_v17  ;;  %v1802_v31 = vsub.f32 %v3911_v45, %v1719_v17 }
 0x3d3   : > { %v2746_v62 = vpop.eup %2745  ;;  %v1903_v13 = vmul.f32 1.442695, %v1795_v49  ;;  %v1905_v1 = vmul.f32 1.442695, %v1796_v57  ;;  %2761 = vpow2.f32 %v1907_v20  ;;  %1956 = vadd.xlane.f32.xlu0 %v1955_v15  ;;  %2001 = vadd.xlane.f32.xlu1 %v2000_v51 }
 0x3d4   : > { %v2748_v52 = vpop.eup %2747  ;;  %v1629_v33 = vpop.permute.xlu1 %1628  ;;  %v1915_v40 = vmul.f32 1.442695, %v1801_v12  ;;  %v1917_v45 = vmul.f32 1.442695, %v1802_v31 }
 0x3d5   : > { %v4613_v61 = vpop.permute.xlu0 %1648  ;;  %2763 = vpow2.f32 %v1903_v13  ;;  %v1765_v53 = vsub.f32 %v3848_v3, %v1629_v33  ;;  %v1766_v63 = vsub.f32 %v3858_v7, %v1629_v33  ;;  %v2003_v50 = vadd.f32 %v2748_v52, %v2746_v62 }
 0x3d6   : > { %2765 = vpow2.f32 %v1905_v1  ;;  %v1773_v48 = vsub.f32 %v3944_v19, %v4613_v61  ;;  %v1774_v2 = vsub.f32 %v3954_v30, %v4613_v61 }
 0x3d7   : > { %v2750_v35 = vpop.eup %2749  ;;  %v1843_v4 = vmul.f32 1.442695, %v1765_v53  ;;  %v1845_v41 = vmul.f32 1.442695, %v1766_v63  ;;  %2767 = vpow2.f32 %v1909_v9  ;;  %2004 = vadd.xlane.f32.xlu0 %v2003_v50 }
 0x3d8   : > { %v2752_v22 = vpop.eup %2751  ;;  %v1634_v36 = vpop.permute.xlu1 %1633  ;;  %v1859_v5 = vmul.f32 1.442695, %v1773_v48  ;;  %v1861_v57 = vmul.f32 1.442695, %v1774_v2 }
 0x3d9   : > { %v2754_v54 = vpop.eup %2753  ;;  %2769 = vpow2.f32 %v1843_v4  ;;  %v1767_v3 = vsub.f32 %v3880_v21, %v1634_v36  ;;  %v1768_v7 = vsub.f32 %v3886_v27, %v1634_v36  ;;  %v1729_v10 = vpop.permute.xlu0 %1728  ;;  %v1958_v14 = vadd.f32 %v2752_v22, %v2750_v35  ;;  %v5215_v36 = vld [vmem:[#allocation20_spill] sm:$0xff] }
 0x3da   : > { %v2756_v58 = vpop.eup %2755  ;;  %2771 = vpow2.f32 %v1845_v41  ;;  %v1805_v20 = vsub.f32 %v3949_v25, %v1729_v10  ;;  %v1806_v15 = vsub.f32 %v3959_v34, %v1729_v10 }
 0x3db   : > { %v2758_v39 = vpop.eup %2757  ;;  %2773 = vpow2.f32 %v1851_v8  ;;  %v1847_v55 = vmul.f32 1.442695, %v1767_v3  ;;  %v1849_v56 = vmul.f32 1.442695, %v1768_v7  ;;  %1959 = vadd.xlane.f32.xlu1 %v1958_v14  ;;  %v2006_v42 = vadd.f32 %v2756_v58, %v2754_v54 }
 0x3dc   : > { %v2760_v43 = vpop.eup %2759  ;;  %2775 = vpow2.f32 %v1853_v44  ;;  %v1714_v60 = vpop.permute.xlu1 %1713  ;;  %v1923_v25 = vmul.f32 1.442695, %v1805_v20  ;;  %v1925_v63 = vmul.f32 1.442695, %v1806_v15  ;;  %v5214_v44 = vld [vmem:[#allocation18_spill] sm:$0xff]  ;;  %v5219_v20 = vld [vmem:[#allocation28_spill] sm:$0xff] }
 0x3dd   : > { %2777 = vpow2.f32 %v1847_v55  ;;  %v1799_v21 = vsub.f32 %v3883_v24, %v1714_v60  ;;  %v1800_v27 = vsub.f32 %v3891_v32, %v1714_v60  ;;  %v2762_v18 = vpop.eup %2761  ;;  %v1961_v38 = vadd.f32 %v2760_v43, %v2758_v39  ;;  %v1659_v16 = vpop.permute.xlu0 %1658  ;;  %v5216_v60 = vld [vmem:[#allocation19_spill] sm:$0xff] }
 0x3de   : > { %2779 = vpow2.f32 %v1849_v56  ;;  %v1777_v13 = vsub.f32 %v3992_v37, %v1659_v16  ;;  %v5213_v37 = vld [vmem:[#allocation22_spill] sm:$0xff] }
 0x3df   : > { %v2764_v0 = vpop.eup %2763  ;;  %2781 = vpow2.f32 %v1915_v40  ;;  %v1911_v23 = vmul.f32 1.442695, %v1799_v21  ;;  %v1913_v11 = vmul.f32 1.442695, %v1800_v27  ;;  %1962 = vadd.xlane.f32.xlu0 %v1961_v38  ;;  %2007 = vadd.xlane.f32.xlu1 %v2006_v42  ;;  %v1778_v12 = vsub.f32 %v5213_v37, %v1659_v16  ;;  %v5217_v27 = vld [vmem:[#allocation21_spill] sm:$0xff] }
 0x3e0   : > { %v2766_v19 = vpop.eup %2765  ;;  %2783 = vpow2.f32 %v1917_v45  ;;  %v1644_v24 = vpop.permute.xlu1 %1643  ;;  %v1867_v4 = vmul.f32 1.442695, %v1777_v13 }
 0x3e1   : > { %2785 = vpow2.f32 %v1911_v23  ;;  %v1771_v32 = vsub.f32 %v3928_v59, %v1644_v24  ;;  %v1772_v28 = vsub.f32 %v3934_v6, %v1644_v24  ;;  %v2768_v17 = vpop.eup %2767  ;;  %v2009_v49 = vadd.f32 %v2766_v19, %v2764_v0  ;;  %v1739_v59 = vpop.permute.xlu0 %1738  ;;  %v5211_v6 = vld [vmem:[#allocation16_spill] sm:$0xff]  ;;  %v5218_v23 = vld [vmem:[#allocation26_spill] sm:$0xff] }
 0x3e2   : > { %2787 = vpow2.f32 %v1913_v11  ;;  %v2012_v10 = vadd.f32 %v2768_v17, %v2762_v18  ;;  %v1809_v14 = vsub.f32 %v3997_v47, %v1739_v59  ;;  %v1869_v43 = vmul.f32 1.442695, %v1778_v12 }
 0x3e3   : > { %v2770_v30 = vpop.eup %2769  ;;  %v1855_v51 = vmul.f32 1.442695, %v1771_v32  ;;  %v1857_v62 = vmul.f32 1.442695, %v1772_v28  ;;  %2789 = vpow2.f32 %v1859_v5  ;;  %2010 = vadd.xlane.f32.xlu0 %v2009_v49  ;;  %v1810_v45 = vsub.f32 %v4007_v46, %v1739_v59  ;;  %v5220_v49 = vld [vmem:[#allocation23_spill] sm:$0xff] }
 0x3e4   : > { %v2772_v26 = vpop.eup %2771  ;;  %v1724_v1 = vpop.permute.xlu1 %1723  ;;  %v1931_v2 = vmul.f32 1.442695, %v1809_v14 }
 0x3e5   : > { %v2774_v52 = vpop.eup %2773  ;;  %2791 = vpow2.f32 %v1855_v51  ;;  %v1803_v9 = vsub.f32 %v5211_v6, %v1724_v1  ;;  %v1804_v33 = vsub.f32 %v5212_v29, %v1724_v1  ;;  %v1964_v53 = vadd.f32 %v2772_v26, %v2770_v30  ;;  %v1669_v39 = vpop.permute.xlu0 %1668 }
 0x3e6   : > { %v2776_v61 = vpop.eup %2775  ;;  %2793 = vpow2.f32 %v1857_v62  ;;  %v1781_v11 = vsub.f32 %v5218_v23, %v1669_v39  ;;  %v1933_v46 = vmul.f32 1.442695, %v1810_v45  ;;  %v1782_v24 = vsub.f32 %v5219_v20, %v1669_v39 }
 0x3e7   : > { %v2778_v34 = vpop.eup %2777  ;;  %2795 = vpow2.f32 %v1861_v57  ;;  %v1919_v50 = vmul.f32 1.442695, %v1803_v9  ;;  %v1921_v35 = vmul.f32 1.442695, %v1804_v33  ;;  %1965 = vadd.xlane.f32.xlu1 %v1964_v53  ;;  %v1970_v47 = vadd.f32 %v2776_v61, %v2774_v52  ;;  %v5221_v57 = vld [vmem:[#allocation24_spill] sm:$0xff]  ;;  %v5222_v9 = vld [vmem:[#allocation27_spill] sm:$0xff] }
 0x3e8   : > { %v2780_v8 = vpop.eup %2779  ;;  %2797 = vpow2.f32 %v1923_v25  ;;  %v1654_v41 = vpop.permute.xlu1 %1653  ;;  %v1875_v13 = vmul.f32 1.442695, %v1781_v11  ;;  %v1877_v6 = vmul.f32 1.442695, %v1782_v24  ;;  %v5223_v33 = vld [vmem:[#allocation29_spill] sm:$0xff] }
 0x3e9   : > { %v2782_v22 = vpop.eup %2781  ;;  %2799 = vpow2.f32 %v1919_v50  ;;  %v1775_v31 = vsub.f32 %v5214_v44, %v1654_v41  ;;  %v1776_v54 = vsub.f32 %v5215_v36, %v1654_v41  ;;  %v1967_v7 = vadd.f32 %v2780_v8, %v2778_v34  ;;  %v1749_v17 = vpop.permute.xlu0 %1748 }
 0x3ea   : > { %v2784_v3 = vpop.eup %2783  ;;  %2801 = vpow2.f32 %v1921_v35  ;;  %v1813_v29 = vsub.f32 %v5222_v9, %v1749_v17  ;;  %v1814_v61 = vsub.f32 %v5223_v33, %v1749_v17  ;;  %v5224_v35 = vld [vmem:[#allocation25_spill] sm:$0xff] }
 0x3eb   : > { %v2786_v58 = vpop.eup %2785  ;;  %2803 = vpow2.f32 %v1925_v63  ;;  %v1863_v40 = vmul.f32 1.442695, %v1775_v31  ;;  %v1865_v55 = vmul.f32 1.442695, %v1776_v54  ;;  %1968 = vadd.xlane.f32.xlu0 %v1967_v7  ;;  %2013 = vadd.xlane.f32.xlu1 %v2012_v10  ;;  %v2018_v26 = vadd.f32 %v2784_v3, %v2782_v22  ;;  %v2901_v63 = vld [vmem:[%s3350_s16 + $0x1e0] sm:$0xff] }
 0x3ec   : > { %v2788_v56 = vpop.eup %2787  ;;  %2805 = vpow2.f32 %v1867_v4  ;;  %v1734_v48 = vpop.permute.xlu1 %1733  ;;  %v1939_v36 = vmul.f32 1.442695, %v1813_v29  ;;  %v1941_v54 = vmul.f32 1.442695, %v1814_v61 }
 0x3ed   : > { %2807 = vpow2.f32 %v1863_v40  ;;  %v1807_v21 = vsub.f32 %v5216_v60, %v1734_v48  ;;  %v1808_v18 = vsub.f32 %v5217_v27, %v1734_v48  ;;  %v2015_v38 = vadd.f32 %v2788_v56, %v2786_v58  ;;  %v2790_v42 = vpop.eup %2789 }
 0x3ee   : > { %2809 = vpow2.f32 %v1865_v55 }
 0x3ef   : > { %v2792_v0 = vpop.eup %2791  ;;  %v1927_v16 = vmul.f32 1.442695, %v1807_v21  ;;  %v1929_v19 = vmul.f32 1.442695, %v1808_v18  ;;  %2811 = vpow2.f32 %v1869_v43  ;;  %2016 = vadd.xlane.f32.xlu0 %v2015_v38  ;;  %1971 = vadd.xlane.f32.xlu1 %v1970_v47 }
 0x3f0   : > { %v2794_v5 = vpop.eup %2793  ;;  %v1664_v32 = vpop.permute.xlu1 %1663 }
 0x3f1   : > { %v2796_v28 = vpop.eup %2795  ;;  %2813 = vpow2.f32 %v1927_v16  ;;  %v1779_v30 = vsub.f32 %v5220_v49, %v1664_v32  ;;  %v1780_v15 = vsub.f32 %v5221_v57, %v1664_v32  ;;  %v1973_v51 = vadd.f32 %v2794_v5, %v2792_v0 }
 0x3f2   : > { %v2798_v62 = vpop.eup %2797  ;;  %2815 = vpow2.f32 %v1929_v19  ;;  %v1976_v4 = vadd.f32 %v2796_v28, %v2790_v42 }
 0x3f3   : > { %v2800_v25 = vpop.eup %2799  ;;  %2817 = vpow2.f32 %v1931_v2  ;;  %v1871_v1 = vmul.f32 1.442695, %v1779_v30  ;;  %v1873_v52 = vmul.f32 1.442695, %v1780_v15  ;;  %1974 = vadd.xlane.f32.xlu0 %v1973_v51  ;;  %2019 = vadd.xlane.f32.xlu1 %v2018_v26 }
 0x3f4   : > { %v2802_v59 = vpop.eup %2801  ;;  %2819 = vpow2.f32 %v1933_v46  ;;  %v1744_v53 = vpop.permute.xlu1 %1743 }
 0x3f5   : > { %v2804_v34 = vpop.eup %2803  ;;  %2821 = vpow2.f32 %v1871_v1  ;;  %v1811_v50 = vsub.f32 %v2901_v63, %v1744_v53  ;;  %v1812_v8 = vsub.f32 %v5224_v35, %v1744_v53  ;;  %v2021_v37 = vadd.f32 %v2802_v59, %v2800_v25 }
 0x3f6   : > { %v2806_v12 = vpop.eup %2805  ;;  %2823 = vpow2.f32 %v1873_v52  ;;  %v2024_v10 = vadd.f32 %v2804_v34, %v2798_v62 }
 0x3f7   : > { %v2808_v41 = vpop.eup %2807  ;;  %2825 = vpow2.f32 %v1875_v13  ;;  %v1935_v22 = vmul.f32 1.442695, %v1811_v50  ;;  %v1937_v44 = vmul.f32 1.442695, %v1812_v8  ;;  %2022 = vadd.xlane.f32.xlu0 %v2021_v37  ;;  %1977 = vadd.xlane.f32.xlu1 %v1976_v4 }
 0x3f8   : > { %v2810_v31 = vpop.eup %2809  ;;  %2827 = vpow2.f32 %v1877_v6 }
 0x3f9   : > { %2829 = vpow2.f32 %v1935_v22  ;;  %v1979_v3 = vadd.f32 %v2810_v31, %v2808_v41  ;;  %v2812_v7 = vpop.eup %2811 }
 0x3fa   : > { %2831 = vpow2.f32 %v1937_v44  ;;  %v1982_v56 = vadd.f32 %v2812_v7, %v2806_v12 }
 0x3fb   : > { %v2814_v58 = vpop.eup %2813  ;;  %2833 = vpow2.f32 %v1939_v36  ;;  %1980 = vadd.xlane.f32.xlu0 %v1979_v3  ;;  %2025 = vadd.xlane.f32.xlu1 %v2024_v10 }
 0x3fc   : > { %v2816_v14 = vpop.eup %2815  ;;  %2835 = vpow2.f32 %v1941_v54 }
 0x3fd   : > { %v2818_v39 = vpop.eup %2817  ;;  %v2027_v40 = vadd.f32 %v2816_v14, %v2814_v58 }
 0x3fe   : > { %v2820_v55 = vpop.eup %2819 }
 0x3ff   : > { %v2822_v43 = vpop.eup %2821  ;;  %2028 = vadd.xlane.f32.xlu0 %v2027_v40  ;;  %1983 = vadd.xlane.f32.xlu1 %v1982_v56  ;;  %v2030_v27 = vadd.f32 %v2820_v55, %v2818_v39 }
 0x400   : > { %v2824_v45 = vpop.eup %2823 }
 0x401   : > { %v2826_v48 = vpop.eup %2825  ;;  %v1985_v60 = vadd.f32 %v2824_v45, %v2822_v43 }
 0x402   : > { %v2828_v21 = vpop.eup %2827 }
 0x403   : > { %v2830_v18 = vpop.eup %2829  ;;  %1986 = vadd.xlane.f32.xlu0 %v1985_v60  ;;  %2031 = vadd.xlane.f32.xlu1 %v2030_v27  ;;  %v1988_v0 = vadd.f32 %v2828_v21, %v2826_v48 }
 0x404   : > { %v2832_v38 = vpop.eup %2831 }
 0x405   : > { %v2033_v42 = vadd.f32 %v2832_v38, %v2830_v18  ;;  %v2834_v47 = vpop.eup %2833 }
 0x406   : > { %v2836_v2 = vpop.eup %2835 }
 0x407   : > { %2034 = vadd.xlane.f32.xlu0 %v2033_v42  ;;  %1989 = vadd.xlane.f32.xlu1 %v1988_v0  ;;  %v2036_v23 = vadd.f32 %v2836_v2, %v2834_v47 }
 0x40b   : > { %2037 = vadd.xlane.f32.xlu1 %v2036_v23 }
 0x40c   : > { %3001 = shalt.err (!%p2998_p9)
}
 0x40d   : > { %s3002_s16 = scalar_lea.hbm %s4653_s10, 8192  ;;  %s3006_s19 = scalar_lea.hbm %s5225_s8, 16384 }
 0x40e   : > { %p3003_p13 = scmp.ne.s32.totalorder %s4653_s10, %s3002_s16  ;;  %p3007_p12 = scmp.lt.u32.totalorder %s4653_s10, %s5225_s8 }
 0x40f   : > { %p3008_p4 = scmp.lt.u32.totalorder %s3006_s19, %s3002_s16  ;;  %p3010_p10 = scmp.lt.u32.totalorder %s3002_s16, %s4653_s10 }
 0x410   : > { %p3004_p11 = pnand %p3003_p13, %p5226_p2 }
 0x411   : > { %p3009_p7 = por %p3008_p4, %p3007_p12 }
 0x412   : > { %p3005_p3 = pneg %p3004_p11 }
 0x413   : > { %p3011_p8 = por %p3010_p10, %p3009_p7 }
 0x415   : > { %p3012_p0 = pnand %p3011_p8, %p3005_p3 }
 0x417   : > { %3015 = shalt.err (!%p3012_p0)
}
 0x418   : > { %s3092_s11 = smov 256   ;;  %s3093_s15 = smov 512   ;;  %v5227_v11 = vld [vmem:[#allocation30_spill] sm:$0xff]  ;;  %v5228_v16 = vld [vmem:[#allocation32_spill] sm:$0xff]  ;;  %v5230_v46 = vld [vmem:[#allocation33_spill] sm:$0xff] }
 0x419   : > { %s3094_s14 = smov 16   ;;  %v5229_v19 = vsub.f32 %v5227_v11, %v5228_v16  ;;  %v5231_v20 = vld [vmem:[#allocation35_spill] sm:$0xff]  ;;  %v5234_v17 = vld [vmem:[#allocation34_spill] sm:$0xff]  ;;  %v5236_v57 = vld [vmem:[#allocation37_spill] sm:$0xff] }
 0x41a   : > { %2511 = dma.vmem_to_hbm [thread:$0]  (%p5226_p2), %s4656_s17, 8192, %s4653_s10, %s2137_s20, %s3092_s11, %s3093_s15, %s3094_s14   ;;  %v5232_v24 = vsub.f32 %v5230_v46, %v5231_v20  ;;  %v5233_v28 = vld [vmem:[#allocation31_spill] sm:$0xff]  ;;  %v5239_v26 = vld [vmem:[#allocation36_spill] sm:$0xff]  ;;  %v5240_v25 = vld [vmem:[#allocation38_spill] sm:$0xff] }
 0x41b   : > { %v1463_v5 = vmul.f32 1.442695, %v5229_v19  ;;  %v5235_v49 = vsub.f32 %v5233_v28, %v5234_v17  ;;  %v5237_v15 = vld [vmem:[#allocation39_spill] sm:$0xff]  ;;  %v5241_v13 = vsub.f32 %v5239_v26, %v5240_v25  ;;  %v1527_v59 = vld [vmem:[%s5032_s7] sm:$0xff]  ;;  %v5242_v6 = vld [vmem:[#allocation41_spill] sm:$0xff] }
 0x41c   : > { %v1495_v32 = vmul.f32 1.442695, %v5232_v24  ;;  %v5238_v51 = vsub.f32 %v5236_v57, %v5237_v15  ;;  %v5243_v9 = vld [vmem:[#allocation43_spill] sm:$0xff]  ;;  %v1543_v34 = vld [vmem:[%s5032_s7 + $0x80] sm:$0xff]  ;;  %v1544_v8 = vld [vmem:[%s5032_s7 + $0x88] sm:$0xff] }
 0x41d   : > { %2837 = vpow2.f32 %v1463_v5  ;;  %v1497_v30 = vmul.f32 1.442695, %v5235_v49  ;;  %v1467_v1 = vmul.f32 1.442695, %v5241_v13  ;;  %v5244_v29 = vsub.f32 %v5242_v6, %v5243_v9  ;;  %v5245_v37 = vld [vmem:[#allocation40_spill] sm:$0xff]  ;;  %v5246_v12 = vld [vmem:[#allocation42_spill] sm:$0xff] }
 0x41e   : > { %2839 = vpow2.f32 %v1495_v32  ;;  %v1465_v62 = vmul.f32 1.442695, %v5238_v51  ;;  %v5247_v4 = vsub.f32 %v5245_v37, %v5246_v12  ;;  %v1528_v3 = vld [vmem:[%s5032_s7 + $0x8] sm:$0xff]  ;;  %v5248_v7 = vld [vmem:[#allocation44_spill] sm:$0xff]  ;;  %v5249_v10 = vld [vmem:[#allocation46_spill] sm:$0xff] }
 0x41f   : > { %2841 = vpow2.f32 %v1497_v30  ;;  %v1499_v33 = vmul.f32 1.442695, %v5244_v29  ;;  %v5250_v58 = vsub.f32 %v5248_v7, %v5249_v10  ;;  %v5251_v40 = vld [vmem:[#allocation45_spill] sm:$0xff]  ;;  %v5252_v55 = vld [vmem:[#allocation47_spill] sm:$0xff]  ;;  %v1529_v27 = vld [vmem:[%s5032_s7 + $0x10] sm:$0xff] }
 0x420   : > { %2843 = vpow2.f32 %v1465_v62  ;;  %v1469_v41 = vmul.f32 1.442695, %v5247_v4  ;;  %v5253_v56 = vsub.f32 %v5251_v40, %v5252_v55  ;;  %v5254_v38 = vld [vmem:[#allocation49_spill] sm:$0xff]  ;;  %v5255_v42 = vld [vmem:[#allocation51_spill] sm:$0xff]  ;;  %v1545_v16 = vld [vmem:[%s5032_s7 + $0x90] sm:$0xff] }
 0x421   : > { %2845 = vpow2.f32 %v1467_v1  ;;  %v1501_v14 = vmul.f32 1.442695, %v5250_v58  ;;  %v5256_v47 = vsub.f32 %v5254_v38, %v5255_v42  ;;  %v5257_v5 = vld [vmem:[#allocation48_spill] sm:$0xff]  ;;  %v5258_v46 = vld [vmem:[#allocation50_spill] sm:$0xff]  ;;  %v1530_v49 = vld [vmem:[%s5032_s7 + $0x18] sm:$0xff] }
 0x422   : > { %2847 = vpow2.f32 %v1499_v33  ;;  %v1471_v43 = vmul.f32 1.442695, %v5253_v56  ;;  %v5259_v20 = vsub.f32 %v5257_v5, %v5258_v46  ;;  %v5260_v30 = vld [vmem:[#allocation52_spill] sm:$0xff]  ;;  %v5261_v57 = vld [vmem:[#allocation54_spill] sm:$0xff]  ;;  %v5263_v26 = vld [vmem:[#allocation53_spill] sm:$0xff] }
 0x423   : > { %2849 = vpow2.f32 %v1469_v41  ;;  %v1503_v0 = vmul.f32 1.442695, %v5256_v47  ;;  %v5262_v15 = vsub.f32 %v5260_v30, %v5261_v57  ;;  %v5264_v25 = vld [vmem:[#allocation55_spill] sm:$0xff]  ;;  %v1531_v33 = vld [vmem:[%s5032_s7 + $0x20] sm:$0xff]  ;;  %v5273_v40 = vld [vmem:[#allocation62_spill] sm:$0xff] }
 0x424   : > { %2851 = vpow2.f32 %v1501_v14  ;;  %v1473_v24 = vmul.f32 1.442695, %v5259_v20  ;;  %v5265_v13 = vsub.f32 %v5263_v26, %v5264_v25  ;;  %v1546_v29 = vld [vmem:[%s5032_s7 + $0x98] sm:$0xff]  ;;  %v1547_v41 = vld [vmem:[%s5032_s7 + $0xa0] sm:$0xff]  ;;  %v1532_v14 = vld [vmem:[%s5032_s7 + $0x28] sm:$0xff] }
 0x425   : > { %2853 = vpow2.f32 %v1471_v43  ;;  %v1505_v51 = vmul.f32 1.442695, %v5262_v15  ;;  %v1548_v47 = vld [vmem:[%s5032_s7 + $0xa8] sm:$0xff]  ;;  %v5282_v46 = vld [vmem:[#allocation67_spill] sm:$0xff]  ;;  %v1549_v57 = vld [vmem:[%s5032_s7 + $0xb0] sm:$0xff] }
 0x426   : > { %2855 = vpow2.f32 %v1503_v0  ;;  %v1475_v1 = vmul.f32 1.442695, %v5265_v13  ;;  %v1533_v0 = vld [vmem:[%s5032_s7 + $0x30] sm:$0xff]  ;;  %v5281_v5 = vld [vmem:[#allocation65_spill] sm:$0xff]  ;;  %v5284_v15 = vld [vmem:[#allocation68_spill] sm:$0xff] }
 0x427   : > { %v2838_v52 = vpop.eup %2837  ;;  %2857 = vpow2.f32 %v1473_v24  ;;  %v5283_v20 = vsub.f32 %v5281_v5, %v5282_v46 }
 0x428   : > { %v2840_v61 = vpop.eup %2839  ;;  %v1559_v53 = vmul.f32 %v2838_v52, %v1527_v59  ;;  %2859 = vpow2.f32 %v1505_v51  ;;  %v5285_v51 = vld [vmem:[#allocation70_spill] sm:$0xff] }
 0x429   : > { %v2842_v50 = vpop.eup %2841  ;;  %v1575_v22 = vmul.f32 %v2840_v61, %v1543_v34  ;;  %2861 = vpow2.f32 %v1475_v1  ;;  %v5267_v34 = vld [vmem:[#allocation59_spill] sm:$0xff]  ;;  %v1511_v24 = vmul.f32 1.442695, %v5283_v20  ;;  %v5287_v1 = vld [vmem:[#allocation69_spill] sm:$0xff] }
 0x42a   : > { %v2844_v31 = vpop.eup %2843  ;;  %v1576_v36 = vmul.f32 %v2842_v50, %v1544_v8 }
 0x42b   : > { %v1560_v48 = vmul.f32 %v2844_v31, %v1528_v3  ;;  %v2846_v60 = vpop.eup %2845  ;;  %v5269_v31 = vld [vmem:[#allocation56_spill] sm:$0xff] }
 0x42c   : > { %v1561_v2 = vmul.f32 %v2846_v60, %v1529_v27  ;;  %v2848_v23 = vpop.eup %2847 }
 0x42d   : > { %v1577_v32 = vmul.f32 %v2848_v23, %v1545_v16  ;;  %v2850_v28 = vpop.eup %2849  ;;  %v5279_v23 = vld [vmem:[#allocation66_spill] sm:$0xff] }
 0x42e   : > { %v2852_v52 = vpop.eup %2851  ;;  %v1562_v59 = vmul.f32 %v2850_v28, %v1530_v49 }
 0x42f   : > { %v2854_v6 = vpop.eup %2853 }
 0x430   : > { %v1563_v8 = vmul.f32 %v2854_v6, %v1531_v33  ;;  %v2856_v37 = vpop.eup %2855 }
 0x431   : > { %v1579_v7 = vmul.f32 %v2856_v37, %v1547_v41  ;;  %v2858_v10 = vpop.eup %2857  ;;  %v5294_v37 = vld [vmem:[#allocation75_spill] sm:$0xff] }
 0x432   : > { %v2860_v27 = vpop.eup %2859 }
 0x433   : > { %v2862_v38 = vpop.eup %2861 }
 0x434   : > { %v1565_v28 = vmul.f32 %v2862_v38, %v1533_v0  ;;  %v1551_v38 = vld [vmem:[%s5032_s7 + $0xc0] sm:$0xff] }
 0x448   : > { %v1945_v63 = vpop.xlane.xlu1 %1944 }
 0x449   : > { %v2039_v35 = vadd.f32 %v1945_v63, %v1559_v53  ;;  %v5266_v53 = vld [vmem:[#allocation57_spill] sm:$0xff] }
 0x44a   : > { %v5268_v63 = vsub.f32 %v5266_v53, %v5267_v34  ;;  %v5290_v53 = vld [vmem:[#allocation72_spill] sm:$0xff]  ;;  %v5291_v34 = vld [vmem:[#allocation74_spill] sm:$0xff] }
 0x44b   : > { %2072 = vst.msk [vmem:[%s5032_s7] sm:$0xff] %vm2071_vm1, %v2039_v35  ;;  %v1578_v35 = vmul.f32 %v2852_v52, %v1546_v29  ;;  %v5288_v52 = vld [vmem:[#allocation71_spill] sm:$0xff] }
 0x44c   : > { %v1993_v44 = vpop.xlane.xlu0 %1992  ;;  %v1507_v50 = vmul.f32 1.442695, %v5268_v63  ;;  %v5292_v63 = vsub.f32 %v5290_v53, %v5291_v34 }
 0x44d   : > { %v2055_v54 = vadd.f32 %v1993_v44, %v1575_v22 }
 0x44e   : > { %v1996_v39 = vpop.xlane.xlu1 %1995  ;;  %2863 = vpow2.f32 %v1507_v50  ;;  %v1485_v50 = vmul.f32 1.442695, %v5292_v63  ;;  %v1538_v63 = vld [vmem:[%s5032_s7 + $0x58] sm:$0xff] }
 0x44f   : > { %v2056_v45 = vadd.f32 %v1996_v39, %v1576_v36  ;;  %2088 = vst.msk [vmem:[%s5032_s7 + $0x80] sm:$0xff] %vm2071_vm1, %v2055_v54  ;;  %v5270_v36 = vld [vmem:[#allocation58_spill] sm:$0xff]  ;;  %v5272_v39 = vld [vmem:[#allocation60_spill] sm:$0xff] }
 0x450   : > { %v1948_v21 = vpop.xlane.xlu0 %1947  ;;  %v5271_v54 = vsub.f32 %v5269_v31, %v5270_v36  ;;  %v5274_v55 = vsub.f32 %v5272_v39, %v5273_v40  ;;  %v1550_v36 = vld [vmem:[%s5032_s7 + $0xb8] sm:$0xff]  ;;  %v5299_v39 = vld [vmem:[#allocation77_spill] sm:$0xff] }
 0x451   : > { %2089 = vst.msk [vmem:[%s5032_s7 + $0x88] sm:$0xff] %vm2071_vm1, %v2056_v45  ;;  %v2040_v18 = vadd.f32 %v1948_v21, %v1560_v48  ;;  %v5275_v45 = vld [vmem:[#allocation61_spill] sm:$0xff]  ;;  %v5276_v48 = vld [vmem:[#allocation63_spill] sm:$0xff] }
 0x452   : > { %v1477_v3 = vmul.f32 1.442695, %v5271_v54  ;;  %v1509_v56 = vmul.f32 1.442695, %v5274_v55  ;;  %v5277_v60 = vsub.f32 %v5275_v45, %v5276_v48  ;;  %v1535_v54 = vld [vmem:[%s5032_s7 + $0x40] sm:$0xff]  ;;  %v5300_v40 = vld [vmem:[#allocation79_spill] sm:$0xff] }
 0x453   : > { %2073 = vst.msk [vmem:[%s5032_s7 + $0x8] sm:$0xff] %vm2071_vm1, %v2040_v18  ;;  %v1564_v18 = vmul.f32 %v2858_v10, %v1532_v14  ;;  %v5301_v55 = vsub.f32 %v5299_v39, %v5300_v40  ;;  %v1554_v39 = vld [vmem:[%s5032_s7 + $0xd8] sm:$0xff]  ;;  %v1539_v40 = vld [vmem:[%s5032_s7 + $0x60] sm:$0xff] }
 0x454   : > { %v1951_v11 = vpop.xlane.xlu0 %1950  ;;  %2865 = vpow2.f32 %v1477_v3  ;;  %v1479_v21 = vmul.f32 1.442695, %v5277_v60  ;;  %v5296_v3 = vld [vmem:[#allocation76_spill] sm:$0xff] }
 0x455   : > { %v2041_v19 = vadd.f32 %v1951_v11, %v1561_v2  ;;  %2867 = vpow2.f32 %v1509_v56  ;;  %v5278_v2 = vld [vmem:[#allocation64_spill] sm:$0xff]  ;;  %v1487_v56 = vmul.f32 1.442695, %v5301_v55 }
 0x456   : > { %v5280_v11 = vsub.f32 %v5278_v2, %v5279_v23  ;;  %2869 = vpow2.f32 %v1479_v21 }
 0x457   : > { %2074 = vst.msk [vmem:[%s5032_s7 + $0x10] sm:$0xff] %vm2071_vm1, %v2041_v19 }
 0x458   : > { %v1999_v17 = vpop.xlane.xlu0 %1998  ;;  %v1481_v16 = vmul.f32 1.442695, %v5280_v11 }
 0x459   : > { %v2057_v62 = vadd.f32 %v1999_v17, %v1577_v32  ;;  %v1580_v32 = vmul.f32 %v2860_v27, %v1548_v47  ;;  %v2864_v17 = vpop.eup %2863  ;;  %v5303_v47 = vld [vmem:[#allocation82_spill] sm:$0xff] }
 0x45a   : > { %2871 = vpow2.f32 %v1481_v16  ;;  %v5305_v16 = vld [vmem:[#allocation81_spill] sm:$0xff] }
 0x45b   : > { %2090 = vst.msk [vmem:[%s5032_s7 + $0x90] sm:$0xff] %vm2071_vm1, %v2057_v62  ;;  %v5286_v62 = vsub.f32 %v5284_v15, %v5285_v51  ;;  %2873 = vpow2.f32 %v1511_v24  ;;  %v5308_v15 = vld [vmem:[#allocation84_spill] sm:$0xff]  ;;  %v5309_v51 = vld [vmem:[#allocation86_spill] sm:$0xff] }
 0x45c   : > { %v1954_v9 = vpop.xlane.xlu1 %1953 }
 0x45d   : > { %v2042_v61 = vadd.f32 %v1954_v9, %v1562_v59  ;;  %v1513_v26 = vmul.f32 1.442695, %v5286_v62  ;;  %v5289_v59 = vsub.f32 %v5287_v1, %v5288_v52  ;;  %v1581_v9 = vmul.f32 %v2864_v17, %v1549_v57  ;;  %v1537_v57 = vld [vmem:[%s5032_s7 + $0x50] sm:$0xff]  ;;  %v5311_v1 = vld [vmem:[#allocation85_spill] sm:$0xff]  ;;  %v5312_v52 = vld [vmem:[#allocation87_spill] sm:$0xff] }
 0x45e   : > { %v2866_v29 = vpop.eup %2865  ;;  %v5310_v62 = vsub.f32 %v5308_v15, %v5309_v51 }
 0x45f   : > { %2075 = vst.msk [vmem:[%s5032_s7 + $0x18] sm:$0xff] %vm2071_vm1, %v2042_v61  ;;  %v1483_v6 = vmul.f32 1.442695, %v5289_v59  ;;  %v1534_v61 = vld [vmem:[%s5032_s7 + $0x38] sm:$0xff]  ;;  %2875 = vpow2.f32 %v1513_v26  ;;  %v2868_v41 = vpop.eup %2867  ;;  %v5313_v59 = vsub.f32 %v5311_v1, %v5312_v52 }
 0x460   : > { %v2002_v12 = vpop.xlane.xlu1 %2001  ;;  %v1957_v4 = vpop.xlane.xlu0 %1956  ;;  %v1582_v45 = vmul.f32 %v2868_v41, %v1550_v36  ;;  %v1521_v26 = vmul.f32 1.442695, %v5310_v62 }
 0x461   : > { %v2058_v22 = vadd.f32 %v2002_v12, %v1578_v35  ;;  %v2043_v44 = vadd.f32 %v1957_v4, %v1563_v8  ;;  %2877 = vpow2.f32 %v1483_v6  ;;  %v5293_v8 = vld [vmem:[#allocation73_spill] sm:$0xff]  ;;  %v1491_v6 = vmul.f32 1.442695, %v5313_v59 }
 0x462   : > { %v5295_v12 = vsub.f32 %v5293_v8, %v5294_v37  ;;  %2879 = vpow2.f32 %v1485_v50  ;;  %v1553_v50 = vld [vmem:[%s5032_s7 + $0xd0] sm:$0xff] }
 0x463   : > { %2091 = vst.msk [vmem:[%s5032_s7 + $0x98] sm:$0xff] %vm2071_vm1, %v2058_v22  ;;  %2076 = vst.msk [vmem:[%s5032_s7 + $0x20] sm:$0xff] %vm2071_vm1, %v2043_v44  ;;  %v1566_v22 = vmul.f32 %v2866_v29, %v1534_v61  ;;  %v2870_v44 = vpop.eup %2869  ;;  %v5315_v8 = vld [vmem:[#allocation90_spill] sm:$0xff] }
 0x464   : > { %v2005_v58 = vpop.xlane.xlu0 %2004  ;;  %v1515_v4 = vmul.f32 1.442695, %v5295_v12  ;;  %v1567_v48 = vmul.f32 %v2870_v44, %v1535_v54  ;;  %v5318_v44 = vld [vmem:[#allocation91_spill] sm:$0xff] }
 0x465   : > { %v2059_v43 = vadd.f32 %v2005_v58, %v1579_v7  ;;  %v5297_v7 = vld [vmem:[#allocation78_spill] sm:$0xff] }
 0x466   : > { %v5298_v10 = vsub.f32 %v5296_v3, %v5297_v7  ;;  %2881 = vpow2.f32 %v1515_v4 }
 0x467   : > { %2092 = vst.msk [vmem:[%s5032_s7 + $0xa0] sm:$0xff] %vm2071_vm1, %v2059_v43  ;;  %v2872_v43 = vpop.eup %2871 }
 0x468   : > { %v1960_v42 = vpop.xlane.xlu1 %1959  ;;  %v1517_v58 = vmul.f32 1.442695, %v5298_v10  ;;  %v2874_v60 = vpop.eup %2873 }
 0x469   : > { %v2044_v19 = vadd.f32 %v1960_v42, %v1564_v18  ;;  %v1536_v18 = vld [vmem:[%s5032_s7 + $0x48] sm:$0xff]  ;;  %v5302_v42 = vld [vmem:[#allocation80_spill] sm:$0xff]  ;;  %v2876_v20 = vpop.eup %2875 }
 0x46a   : > { %2883 = vpow2.f32 %v1517_v58  ;;  %v5304_v0 = vsub.f32 %v5302_v42, %v5303_v47  ;;  %v1568_v24 = vmul.f32 %v2872_v43, %v1536_v18  ;;  %v5320_v43 = vld [vmem:[#allocation92_spill] sm:$0xff] }
 0x46b   : > { %2077 = vst.msk [vmem:[%s5032_s7 + $0x28] sm:$0xff] %vm2071_vm1, %v2044_v19  ;;  %2885 = vpow2.f32 %v1487_v56  ;;  %v5306_v19 = vld [vmem:[#allocation83_spill] sm:$0xff] }
 0x46c   : > { %v2008_v49 = vpop.xlane.xlu1 %2007  ;;  %v1963_v30 = vpop.xlane.xlu0 %1962  ;;  %v1489_v2 = vmul.f32 1.442695, %v5304_v0  ;;  %v5307_v5 = vsub.f32 %v5305_v16, %v5306_v19  ;;  %v1540_v0 = vld [vmem:[%s5032_s7 + $0x68] sm:$0xff] }
 0x46d   : > { %v2060_v25 = vadd.f32 %v2008_v49, %v1580_v32  ;;  %v2045_v13 = vadd.f32 %v1963_v30, %v1565_v28  ;;  %v1583_v32 = vmul.f32 %v2874_v60, %v1551_v38  ;;  %v2878_v28 = vpop.eup %2877  ;;  %v1552_v30 = vld [vmem:[%s5032_s7 + $0xc8] sm:$0xff] }
 0x46e   : > { %v1519_v46 = vmul.f32 1.442695, %v5307_v5  ;;  %2887 = vpow2.f32 %v1489_v2  ;;  %v1584_v29 = vmul.f32 %v2876_v20, %v1552_v30  ;;  %v1555_v2 = vld [vmem:[%s5032_s7 + $0xe0] sm:$0xff] }
 0x46f   : > { %2093 = vst.msk [vmem:[%s5032_s7 + $0xa8] sm:$0xff] %vm2071_vm1, %v2060_v25  ;;  %2078 = vst.msk [vmem:[%s5032_s7 + $0x30] sm:$0xff] %vm2071_vm1, %v2045_v13 }
 0x470   : > { %v2011_v33 = vpop.xlane.xlu0 %2010  ;;  %2889 = vpow2.f32 %v1519_v46 }
 0x471   : > { %v2061_v35 = vadd.f32 %v2011_v33, %v1581_v9  ;;  %v2880_v9 = vpop.eup %2879  ;;  %v1569_v33 = vmul.f32 %v2878_v28, %v1537_v57  ;;  %2891 = vpow2.f32 %v1521_v26  ;;  %v1541_v28 = vld [vmem:[%s5032_s7 + $0x70] sm:$0xff] }
 0x472   : > { %v2882_v61 = vpop.eup %2881  ;;  %2893 = vpow2.f32 %v1491_v6  ;;  %v1570_v3 = vmul.f32 %v2880_v9, %v1538_v63 }
 0x473   : > { %2094 = vst.msk [vmem:[%s5032_s7 + $0xb0] sm:$0xff] %vm2071_vm1, %v2061_v35  ;;  %v5314_v35 = vld [vmem:[#allocation88_spill] sm:$0xff]  ;;  %v1585_v7 = vmul.f32 %v2882_v61, %v1553_v50  ;;  %v1558_v61 = vld [vmem:[%s5032_s7 + $0xf8] sm:$0xff] }
 0x474   : > { %v1966_v31 = vpop.xlane.xlu1 %1965  ;;  %v5316_v37 = vsub.f32 %v5314_v35, %v5315_v8  ;;  %v2884_v54 = vpop.eup %2883 }
 0x475   : > { %v2046_v14 = vadd.f32 %v1966_v31, %v1566_v22  ;;  %v5317_v22 = vld [vmem:[#allocation89_spill] sm:$0xff]  ;;  %v2886_v10 = vpop.eup %2885 }
 0x476   : > { %v1493_v12 = vmul.f32 1.442695, %v5316_v37  ;;  %v5319_v31 = vsub.f32 %v5317_v22, %v5318_v44  ;;  %v1571_v18 = vmul.f32 %v2886_v10, %v1539_v40 }
 0x477   : > { %2079 = vst.msk [vmem:[%s5032_s7 + $0x38] sm:$0xff] %vm2071_vm1, %v2046_v14 }
 0x478   : > { %v2014_v21 = vpop.xlane.xlu1 %2013  ;;  %v1969_v27 = vpop.xlane.xlu0 %1968  ;;  %v1523_v36 = vmul.f32 1.442695, %v5319_v31  ;;  %2895 = vpow2.f32 %v1493_v12 }
 0x479   : > { %v2062_v23 = vadd.f32 %v2014_v21, %v1582_v45  ;;  %v2047_v11 = vadd.f32 %v1969_v27, %v1567_v48  ;;  %v5321_v45 = vld [vmem:[#allocation93_spill] sm:$0xff]  ;;  %v2888_v21 = vpop.eup %2887  ;;  %v1586_v27 = vmul.f32 %v2884_v54, %v1554_v39 }
 0x47a   : > { %v5322_v48 = vsub.f32 %v5320_v43, %v5321_v45  ;;  %2897 = vpow2.f32 %v1523_v36  ;;  %v2890_v38 = vpop.eup %2889  ;;  %v1572_v19 = vmul.f32 %v2888_v21, %v1540_v0 }
 0x47b   : > { %2095 = vst.msk [vmem:[%s5032_s7 + $0xb8] sm:$0xff] %vm2071_vm1, %v2062_v23  ;;  %2080 = vst.msk [vmem:[%s5032_s7 + $0x40] sm:$0xff] %vm2071_vm1, %v2047_v11  ;;  %v2892_v16 = vpop.eup %2891  ;;  %v1587_v5 = vmul.f32 %v2890_v38, %v1555_v2 }
 0x47c   : > { %v1972_v17 = vpop.xlane.xlu1 %1971  ;;  %v2017_v49 = vpop.xlane.xlu0 %2016  ;;  %v1525_v60 = vmul.f32 1.442695, %v5322_v48 }
 0x47d   : > { %v2048_v25 = vadd.f32 %v1972_v17, %v1568_v24  ;;  %v2063_v13 = vadd.f32 %v2017_v49, %v1583_v32  ;;  %v2894_v46 = vpop.eup %2893  ;;  %v1556_v32 = vld [vmem:[%s5032_s7 + $0xe8] sm:$0xff] }
 0x47e   : > { %2899 = vpow2.f32 %v1525_v60  ;;  %v1588_v57 = vmul.f32 %v2892_v16, %v1556_v32  ;;  %v1573_v15 = vmul.f32 %v2894_v46, %v1541_v28 }
 0x47f   : > { %2081 = vst.msk [vmem:[%s5032_s7 + $0x48] sm:$0xff] %vm2071_vm1, %v2048_v25  ;;  %2096 = vst.msk [vmem:[%s5032_s7 + $0xc0] sm:$0xff] %vm2071_vm1, %v2063_v13  ;;  %v1542_v25 = vld [vmem:[%s5032_s7 + $0x78] sm:$0xff]  ;;  %v1557_v13 = vld [vmem:[%s5032_s7 + $0xf0] sm:$0xff] }
 0x480   : > { %v2020_v53 = vpop.xlane.xlu1 %2019  ;;  %v1975_v34 = vpop.xlane.xlu0 %1974 }
 0x481   : > { %v2064_v4 = vadd.f32 %v2020_v53, %v1584_v29  ;;  %v2049_v41 = vadd.f32 %v1975_v34, %v1569_v33 }
 0x482   : > { %v2896_v30 = vpop.eup %2895 }
 0x483   : > { %2097 = vst.msk [vmem:[%s5032_s7 + $0xc8] sm:$0xff] %vm2071_vm1, %v2064_v4  ;;  %2082 = vst.msk [vmem:[%s5032_s7 + $0x50] sm:$0xff] %vm2071_vm1, %v2049_v41  ;;  %v1574_v59 = vmul.f32 %v2896_v30, %v1542_v25 }
 0x484   : > { %v1978_v58 = vpop.xlane.xlu1 %1977  ;;  %v2023_v14 = vpop.xlane.xlu0 %2022 }
 0x485   : > { %v2050_v55 = vadd.f32 %v1978_v58, %v1570_v3  ;;  %v2065_v56 = vadd.f32 %v2023_v14, %v1585_v7  ;;  %v2898_v51 = vpop.eup %2897 }
 0x486   : > { %v1589_v6 = vmul.f32 %v2898_v51, %v1557_v13 }
 0x487   : > { %2083 = vst.msk [vmem:[%s5032_s7 + $0x58] sm:$0xff] %vm2071_vm1, %v2050_v55  ;;  %2098 = vst.msk [vmem:[%s5032_s7 + $0xd0] sm:$0xff] %vm2071_vm1, %v2065_v56 }
 0x488   : > { %v2026_v42 = vpop.xlane.xlu1 %2025  ;;  %v1981_v47 = vpop.xlane.xlu0 %1980 }
 0x489   : > { %v2066_v23 = vadd.f32 %v2026_v42, %v1586_v27  ;;  %v2051_v11 = vadd.f32 %v1981_v47, %v1571_v18  ;;  %v2900_v9 = vpop.eup %2899 }
 0x48a   : > { %v1590_v63 = vmul.f32 %v2900_v9, %v1558_v61 }
 0x48b   : > { %2099 = vst.msk [vmem:[%s5032_s7 + $0xd8] sm:$0xff] %vm2071_vm1, %v2066_v23  ;;  %2084 = vst.msk [vmem:[%s5032_s7 + $0x60] sm:$0xff] %vm2071_vm1, %v2051_v11 }
 0x48c   : > { %v1984_v20 = vpop.xlane.xlu1 %1983  ;;  %v2029_v24 = vpop.xlane.xlu0 %2028 }
 0x48d   : > { %v2052_v17 = vadd.f32 %v1984_v20, %v1572_v19  ;;  %v2067_v49 = vadd.f32 %v2029_v24, %v1587_v5 }
 0x48f   : > { %2085 = vst.msk [vmem:[%s5032_s7 + $0x68] sm:$0xff] %vm2071_vm1, %v2052_v17  ;;  %2100 = vst.msk [vmem:[%s5032_s7 + $0xe0] sm:$0xff] %vm2071_vm1, %v2067_v49 }
 0x490   : > { %v2032_v62 = vpop.xlane.xlu1 %2031  ;;  %v1987_v26 = vpop.xlane.xlu0 %1986 }
 0x491   : > { %v2068_v1 = vadd.f32 %v2032_v62, %v1588_v57  ;;  %v2053_v52 = vadd.f32 %v1987_v26, %v1573_v15 }
 0x493   : > { %2101 = vst.msk [vmem:[%s5032_s7 + $0xe8] sm:$0xff] %vm2071_vm1, %v2068_v1  ;;  %2086 = vst.msk [vmem:[%s5032_s7 + $0x70] sm:$0xff] %vm2071_vm1, %v2053_v52 }
 0x494   : > { %v1990_v29 = vpop.xlane.xlu1 %1989  ;;  %v2035_v33 = vpop.xlane.xlu0 %2034 }
 0x495   : > { %v2054_v53 = vadd.f32 %v1990_v29, %v1574_v59  ;;  %v2069_v34 = vadd.f32 %v2035_v33, %v1589_v6 }
 0x497   : > { %2087 = vst.msk [vmem:[%s5032_s7 + $0x78] sm:$0xff] %vm2071_vm1, %v2054_v53  ;;  %2102 = vst.msk [vmem:[%s5032_s7 + $0xf0] sm:$0xff] %vm2071_vm1, %v2069_v34 }
 0x498   : > { %v2038_v50 = vpop.xlane.xlu1 %2037 }
 0x499   : > { %v2070_v35 = vadd.f32 %v2038_v50, %v1590_v63 }
 0x49b   : > { %2103 = vst.msk [vmem:[%s5032_s7 + $0xf8] sm:$0xff] %vm2071_vm1, %v2070_v35 }
 0x49c PF: > { %s5323_s24 = sld [smem:[#allocation14_spill]]  ;;  %s5324_s30 = sld [smem:[#allocation15_spill]] }
 0x49d   : > { %p5326_p5 = scmp.ge.s32.totalorder %s3078_s29, 2 }
 0x4a2   : > { %s2202_s19 = sand.u32 1, %s5323_s24   ;;  %p5325_p2 = scmp.ne.s32.totalorder %s5324_s30, 0 }
 0x4a3   : > { %s2203_s22 = scalar_lea.sflag [#allocation5], %s2202_s19 }
 0x4a4   : > { %p2525_p1 = pnand %p5326_p5, %p5325_p2 }
 0x4a6   : > { %3053 = dma.done.wait (!%p2525_p1), %s2203_s22, 8192  }
 0x4a7   : > { %3055 = vsyncadd (!%p2525_p1), %s2203_s22, 4294959104  ;;  %s23_s29 = sadd.s32 1, %s3078_s29   ;;  %s5327_s24 = smov %s3062_s25 }
 0x4a8   : > { %p20_p6 = scmp.ge.s32.totalorder %s23_s29, 4   ;;  %s5328_s25 = smov %s3066_s26 }
 0x4a9   : > { %s5329_s26 = smov %s3291_s5  ;;  %s5330_s27 = smov %s3074_s28 }
 0x4aa   : > { %s5331_s28 = smov %s5333_s9  ;;  %22 = sbr.rel (!%p20_p6) target bundleno = 8 (0x8), region = 124 }
 0x4b1   :  { %2208 = vsyncpa [#allocation4], 1 }
 0x4b2   :  { %2210 = vsyncpa [#allocation4 + $0x1], 1 }
 0x4b3   :  { %2211 = vsyncpa [#allocation7], 1 }
 0x4b4   :  { %2212 = vsyncpa [#allocation5], 1 }
 0x4b5   :  { %2214 = vsyncpa [#allocation5 + $0x1], 1 }

</bundles_post_ra>
